<compile_context>
chip_gen: v7x
topology: tpu7x:2x2x1
jax: 0.10.0
libtpu: 0.0.40
codegen_flags: <defaults>
</compile_context>

<pallas_src>
import jax
import jax.numpy as jnp
from jax import lax
from jax.experimental import pallas as pl
from jax.experimental.pallas import tpu as pltpu


# ----------------------------- Pallas kernel ------------------------------- #

def _lstm_fused_kernel(xp0_ref, wih_ref, whh_ref, b_ref, wfc_ref,
                       out_ref, xproj_sc, hbuf_sc, h_st, c_st):
    """Fused multi-layer LSTM + fc.  grid = (time_chunks, layers), both sequential.

    xp0_ref : (TC, Bp, 4*HP)  hoisted layer-0 input pre-activations for this chunk
    wih_ref : (L, HP, 4*HP)   W_ih^T for layers >= 1 (slot 0 unused), resident
    whh_ref : (L, HP, 4*HP)   W_hh^T per layer, resident
    b_ref   : (L, 1, 4*HP)    fused bias (b_ih + b_hh) per layer, resident
    wfc_ref : (1, HP)         fc weight row, resident
    out_ref : (Bp, 1)         fc(h_{T-1}) (bias added outside)
    xproj_sc: (TC, Bp, 4*HP)  chunk input pre-activations (scratch)
    hbuf_sc : (TC, Bp, HP)    this layer's chunk hidden outputs -> next layer's input
    h_st/c_st: (L, Bp, HP)    per-layer recurrent state, persists across chunks
    """
    c_idx = pl.program_id(0)            # time-chunk index (outer)
    l = pl.program_id(1)                # layer index (inner)
    TC, Bp, HP = hbuf_sc.shape
    G = 4 * HP

    # Zero-init this layer's recurrent state at its first chunk (h0 = c0 = 0).
    @pl.when(c_idx == 0)
    def _():
        h_st[l] = jnp.zeros((Bp, HP), jnp.float32)
        c_st[l] = jnp.zeros((Bp, HP), jnp.float32)

    # Chunk-level input pre-activations: x_t @ W_ih^T + b for all TC steps at once.
    @pl.when(l == 0)
    def _():
        xproj_sc[...] = xp0_ref[...] + b_ref[l]          # projection hoisted to XLA

    @pl.when(l > 0)
    def _():
        xin = hbuf_sc[...].reshape(TC * Bp, HP)          # previous layer's chunk output
        xproj_sc[...] = (jnp.dot(xin, wih_ref[l],
                                 preferred_element_type=jnp.float32)
                         .reshape(TC, Bp, G) + b_ref[l])

    # Sequential recurrence over the chunk; only h @ W_hh^T stays in the loop.
    def step(t, carry):
        h, c = carry
        gates = xproj_sc[t] + jnp.dot(h, whh_ref[l],
                                      preferred_element_type=jnp.float32)
        # HP is a multiple of 128 -> every gate slice is lane-tile aligned.
        i = jax.nn.sigmoid(gates[:, 0 * HP:1 * HP])
        f = jax.nn.sigmoid(gates[:, 1 * HP:2 * HP])
        g = jnp.tanh(gates[:, 2 * HP:3 * HP])
        o = jax.nn.sigmoid(gates[:, 3 * HP:4 * HP])
        c = f * c + i * g
        h = o * jnp.tanh(c)
        hbuf_sc[t] = h                                    # feeds the next layer
        return h, c

    h_fin, c_fin = lax.fori_loop(0, TC, step, (h_st[l], c_st[l]), unroll=True)
    h_st[l] = h_fin
    c_st[l] = c_fin

    # Fused fc(out[:, -1, :]) on the last layer's final hidden state:
    # broadcast-multiply + lane reduction instead of an N=1 MXU matmul.
    @pl.when(jnp.logical_and(c_idx == pl.num_programs(0) - 1,
                             l == pl.num_programs(1) - 1))
    def _():
        out_ref[...] = jnp.sum(h_fin * wfc_ref[...], axis=-1, keepdims=True)


# ------------------------------ JAX wrappers -------------------------------- #

def _round_up(n, m):
    return ((n + m - 1) // m) * m


def _time_chunk(T, max_chunk=64):
    tc = min(T, max_chunk)
    while T % tc:
        tc -= 1
    return tc


def _pad_gate_cols(w, H, HP):
    """(rows, 4H) -> (rows, 4*HP): each i/f/g/o block moved to a 128-aligned slot."""
    blocks = [jnp.pad(w[:, k * H:(k + 1) * H], ((0, 0), (0, HP - H)))
              for k in range(4)]
    return jnp.concatenate(blocks, axis=1)


def prepare_kernel_params(params):
    """Pack PyTorch-layout LSTM params into padded / transposed / stacked arrays."""
    layers = params["layers"]
    H = layers[0][1].shape[1]                      # w_hh: (4H, H)
    HP = _round_up(H, 128)
    G = 4 * HP

    wih0_pad = None
    wih_stack, whh_stack, b_stack = [], [], []
    for li, (w_ih, w_hh, b_ih, b_hh) in enumerate(layers):
        whh_t = _pad_gate_cols(w_hh.T, H, HP)                       # (H, G)
        whh_stack.append(jnp.pad(whh_t, ((0, HP - H), (0, 0))))     # (HP, G)
        if li == 0:
            wih0_pad = _pad_gate_cols(w_ih.T, H, HP)                # (D, G), used outside
            wih_stack.append(jnp.zeros((HP, G), jnp.float32))       # unused slot
        else:
            wih_t = _pad_gate_cols(w_ih.T, H, HP)                   # (H, G)
            wih_stack.append(jnp.pad(wih_t, ((0, HP - H), (0, 0))))
        b_stack.append(_pad_gate_cols((b_ih + b_hh).reshape(1, 4 * H), H, HP))

    return {
        "wih0_pad": wih0_pad,                                       # (D, G)
        "wih_stack": jnp.stack(wih_stack),                          # (L, HP, G)
        "whh_stack": jnp.stack(whh_stack),                          # (L, HP, G)
        "b_stack": jnp.stack(b_stack),                              # (L, 1, G)
        "wfc_pad": jnp.pad(params["w_fc"], ((0, 0), (0, HP - H))),  # (1, HP)
        "b_fc": params["b_fc"],                                     # (1,)
    }


@jax.jit
def lstm_model_forward(x_btd, kp):
    """Matches LSTM.forward: stacked LSTM (zero init state) + fc on the last step."""
    B, T, D = x_btd.shape
    L, HP, G = kp["wih_stack"].shape
    Bp = _round_up(B, 8)                  # fp32 sublane tile
    TC = _time_chunk(T)
    NC = T // TC

    x = jnp.transpose(x_btd, (1, 0, 2)).astype(jnp.float32)   # (T, B, D)
    x = jnp.pad(x, ((0, 0), (0, Bp - B), (0, 0)))              # (T, Bp, D)

    # Hoisted layer-0 input projection: one (T*Bp, D) x (D, 4*HP) matmul in XLA.
    xp0 = (x.reshape(T * Bp, D) @ kp["wih0_pad"]).reshape(T, Bp, G)

    out_pad = pl.pallas_call(
        _lstm_fused_kernel,
        out_shape=jax.ShapeDtypeStruct((Bp, 1), jnp.float32),
        grid_spec=pltpu.PrefetchScalarGridSpec(
            num_scalar_prefetch=0,
            grid=(NC, L),                                   # layer is the inner axis
            in_specs=[
                pl.BlockSpec((TC, Bp, G), lambda c, l: (c, 0, 0)),   # layer-0 pre-acts
                pl.BlockSpec((L, HP, G), lambda c, l: (0, 0, 0)),    # W_ih^T stack (resident)
                pl.BlockSpec((L, HP, G), lambda c, l: (0, 0, 0)),    # W_hh^T stack (resident)
                pl.BlockSpec((L, 1, G), lambda c, l: (0, 0, 0)),     # bias stack (resident)
                pl.BlockSpec((1, HP), lambda c, l: (0, 0)),          # fc weight (resident)
            ],
            out_specs=pl.BlockSpec((Bp, 1), lambda c, l: (0, 0)),
            scratch_shapes=[
                pltpu.VMEM((TC, Bp, G), jnp.float32),    # chunk input pre-activations
                pltpu.VMEM((TC, Bp, HP), jnp.float32),   # chunk hidden (inter-layer buffer)
                pltpu.VMEM((L, Bp, HP), jnp.float32),    # per-layer h state
                pltpu.VMEM((L, Bp, HP), jnp.float32),    # per-layer c state
            ],
        ),
        compiler_params=pltpu.CompilerParams(
            dimension_semantics=("arbitrary", "arbitrary")),  # both axes are sequential
    )(xp0, kp["wih_stack"], kp["whh_stack"], kp["b_stack"], kp["wfc_pad"])

    # fc bias is a scalar add on (B, 1) -- negligible, kept outside the kernel.
    return out_pad[:B] + kp["b_fc"].reshape(1, 1)


# ---------------------------- reference (lax) -------------------------------- #

def lstm_model_reference(x_btd, params):
    B = x_btd.shape[0]
    seq = jnp.transpose(x_btd, (1, 0, 2)).astype(jnp.float32)   # (T, B, D)
    for (w_ih, w_hh, b_ih, b_hh) in params["layers"]:
        H = w_hh.shape[1]
        wih_t, whh_t, b = w_ih.T, w_hh.T, b_ih + b_hh

        def step(carry, x_t, wih_t=wih_t, whh_t=whh_t, b=b, H=H):
            h, c = carry
            gates = x_t @ wih_t + h @ whh_t + b
            i = jax.nn.sigmoid(gates[:, 0 * H:1 * H])
            f = jax.nn.sigmoid(gates[:, 1 * H:2 * H])
            g = jnp.tanh(gates[:, 2 * H:3 * H])
            o = jax.nn.sigmoid(gates[:, 3 * H:4 * H])
            c = f * c + i * g
            h = o * jnp.tanh(c)
            return (h, c), h

        init = (jnp.zeros((B, H), jnp.float32), jnp.zeros((B, H), jnp.float32))
        _, seq = lax.scan(step, init, seq)
    return seq[-1] @ params["w_fc"].T + params["b_fc"]


# --------------------------------- main -------------------------------------- #

def init_params(key, input_size, hidden_size, num_layers):
    """PyTorch-style uniform(-1/sqrt(H), 1/sqrt(H)) init, deterministic."""
    k = 1.0 / (hidden_size ** 0.5)
    layers = []
    for layer in range(num_layers):
        d_in = input_size if layer == 0 else hidden_size
        key, k1, k2, k3, k4 = jax.random.split(key, 5)
        w_ih = jax.random.uniform(k1, (4 * hidden_size, d_in), jnp.float32, -k, k)
        w_hh = jax.random.uniform(k2, (4 * hidden_size, hidden_size), jnp.float32, -k, k)
        b_ih = jax.random.uniform(k3, (4 * hidden_size,), jnp.float32, -k, k)
        b_hh = jax.random.uniform(k4, (4 * hidden_size,), jnp.float32, -k, k)
        layers.append((w_ih, w_hh, b_ih, b_hh))
    key, k5, k6 = jax.random.split(key, 3)
    w_fc = jax.random.uniform(k5, (1, hidden_size), jnp.float32, -k, k)
    b_fc = jax.random.uniform(k6, (1,), jnp.float32, -k, k)
    return {"layers": layers, "w_fc": w_fc, "b_fc": b_fc}


if __name__ == "__main__":
    B, T, INPUT_SIZE, HIDDEN, NUM_LAYERS = 2, 8, 4, 32, 2

    key = jax.random.PRNGKey(0)
    key, kx = jax.random.split(key)
    x = jax.random.normal(kx, (B, T, INPUT_SIZE), jnp.float32)   # batch_first input

    params = init_params(key, INPUT_SIZE, HIDDEN, NUM_LAYERS)
    kparams = prepare_kernel_params(params)

    out = lstm_model_forward(x, kparams)
    out = jax.block_until_ready(out)

    ref = lstm_model_reference(x, params)
    assert out.shape == (B, 1), out.shape
    assert jnp.allclose(out, ref, atol=1e-4, rtol=1e-4), (out, ref)

    print("KERNEL_OK")
</pallas_src>

<mosaic_0001>
module attributes {stable_mosaic.version = 11 : i64} {
  func.func @_lstm_fused_kernel(%arg0: i32, %arg1: i32, %arg2: memref<8x8x512xf32, #tpu.memory_space<vmem>>, %arg3: memref<2x128x512xf32, #tpu.memory_space<vmem>>, %arg4: memref<2x128x512xf32, #tpu.memory_space<vmem>>, %arg5: memref<2x1x512xf32, #tpu.memory_space<vmem>>, %arg6: memref<1x128xf32, #tpu.memory_space<vmem>>, %arg7: memref<8x1xf32, #tpu.memory_space<vmem>>, %arg8: memref<8x8x512xf32, #tpu.memory_space<vmem>>, %arg9: memref<8x8x128xf32, #tpu.memory_space<vmem>>, %arg10: memref<2x8x128xf32, #tpu.memory_space<vmem>>, %arg11: memref<2x8x128xf32, #tpu.memory_space<vmem>>) attributes {dimension_semantics = [#tpu.dimension_semantics<arbitrary>, #tpu.dimension_semantics<arbitrary>], iteration_bounds = array<i64: 1, 2>, scalar_prefetch = 0 : i64, scratch_operands = 4 : i64, tpu.core_type = #tpu.core_type<tc>, window_params = [{transform_indices = @transform_0, window_bounds = array<i64: 8, 8, 512>}, {pipeline_mode = #tpu.pipeline_mode<synchronous>, transform_indices = @transform_1, window_bounds = array<i64: 2, 128, 512>}, {pipeline_mode = #tpu.pipeline_mode<synchronous>, transform_indices = @transform_2, window_bounds = array<i64: 2, 128, 512>}, {pipeline_mode = #tpu.pipeline_mode<synchronous>, transform_indices = @transform_3, window_bounds = array<i64: 2, 1, 512>}, {pipeline_mode = #tpu.pipeline_mode<synchronous>, transform_indices = @transform_4, window_bounds = array<i64: 1, 128>}, {pipeline_mode = #tpu.pipeline_mode<synchronous>, transform_indices = @transform_5, window_bounds = array<i64: 8, 1>}]} {
    %c0_i32 = arith.constant 0 : i32
    %0 = arith.cmpi eq, %arg0, %c0_i32 : i32
    %1 = arith.extui %0 : i1 to i32
    %c0_i32_0 = arith.constant 0 : i32
    %2 = arith.cmpi ne, %1, %c0_i32_0 : i32
    scf.if %2 {
      %cst_95 = arith.constant 0.000000e+00 : f32
      %324 = vector.broadcast %cst_95 : f32 to vector<8x128xf32>
      %325 = arith.index_cast %arg1 : i32 to index
      %c0_96 = arith.constant 0 : index
      %c0_97 = arith.constant 0 : index
      %326 = vector.load %arg10[%325, %c0_96, %c0_97] : memref<2x8x128xf32, #tpu.memory_space<vmem>>, vector<1x8x128xf32>
      %327 = vector.shape_cast %326 : vector<1x8x128xf32> to vector<8x128xf32>
      %328 = vector.shape_cast %324 : vector<8x128xf32> to vector<1x8x128xf32>
      tpu.vector_store %arg10[%325, %c0_96, %c0_97], %328 {strides = array<i32>} : memref<2x8x128xf32, #tpu.memory_space<vmem>>, vector<1x8x128xf32>,
      %cst_98 = arith.constant 0.000000e+00 : f32
      %329 = vector.broadcast %cst_98 : f32 to vector<8x128xf32>
      %330 = arith.index_cast %arg1 : i32 to index
      %c0_99 = arith.constant 0 : index
      %c0_100 = arith.constant 0 : index
      %331 = vector.load %arg11[%330, %c0_99, %c0_100] : memref<2x8x128xf32, #tpu.memory_space<vmem>>, vector<1x8x128xf32>
      %332 = vector.shape_cast %331 : vector<1x8x128xf32> to vector<8x128xf32>
      %333 = vector.shape_cast %329 : vector<8x128xf32> to vector<1x8x128xf32>
      tpu.vector_store %arg11[%330, %c0_99, %c0_100], %333 {strides = array<i32>} : memref<2x8x128xf32, #tpu.memory_space<vmem>>, vector<1x8x128xf32>,
    } else {
    }
    %c0_i32_1 = arith.constant 0 : i32
    %3 = arith.cmpi eq, %arg1, %c0_i32_1 : i32
    %4 = arith.extui %3 : i1 to i32
    %c0_i32_2 = arith.constant 0 : i32
    %5 = arith.cmpi ne, %4, %c0_i32_2 : i32
    scf.if %5 {
      %c0_95 = arith.constant 0 : index
      %c0_96 = arith.constant 0 : index
      %c0_97 = arith.constant 0 : index
      %324 = vector.load %arg2[%c0_95, %c0_96, %c0_97] : memref<8x8x512xf32, #tpu.memory_space<vmem>>, vector<8x8x512xf32>
      %325 = arith.index_cast %arg1 : i32 to index
      %c0_98 = arith.constant 0 : index
      %c0_99 = arith.constant 0 : index
      %326 = vector.load %arg5[%325, %c0_98, %c0_99] : memref<2x1x512xf32, #tpu.memory_space<vmem>>, vector<1x1x512xf32>
      %327 = vector.shape_cast %326 : vector<1x1x512xf32> to vector<1x512xf32>
      %328 = vector.shape_cast %327 : vector<1x512xf32> to vector<1x1x512xf32>
      %329 = vector.broadcast %328 : vector<1x1x512xf32> to vector<8x8x512xf32>
      %330 = arith.addf %324, %329 : vector<8x8x512xf32>
      %c0_100 = arith.constant 0 : index
      %c0_101 = arith.constant 0 : index
      %c0_102 = arith.constant 0 : index
      %331 = vector.load %arg8[%c0_100, %c0_101, %c0_102] : memref<8x8x512xf32, #tpu.memory_space<vmem>>, vector<8x8x512xf32>
      tpu.vector_store %arg8[%c0_100, %c0_101, %c0_102], %330 {strides = array<i32>} : memref<8x8x512xf32, #tpu.memory_space<vmem>>, vector<8x8x512xf32>,
    } else {
    }
    %c0_i32_3 = arith.constant 0 : i32
    %6 = arith.cmpi sgt, %arg1, %c0_i32_3 : i32
    %7 = arith.extui %6 : i1 to i32
    %c0_i32_4 = arith.constant 0 : i32
    %8 = arith.cmpi ne, %7, %c0_i32_4 : i32
    scf.if %8 {
      %c0_95 = arith.constant 0 : index
      %c0_96 = arith.constant 0 : index
      %c0_97 = arith.constant 0 : index
      %324 = vector.load %arg9[%c0_95, %c0_96, %c0_97] : memref<8x8x128xf32, #tpu.memory_space<vmem>>, vector<8x8x128xf32>
      %325 = vector.shape_cast %324 : vector<8x8x128xf32> to vector<64x128xf32>
      %326 = arith.index_cast %arg1 : i32 to index
      %c0_98 = arith.constant 0 : index
      %c0_99 = arith.constant 0 : index
      %327 = vector.load %arg3[%326, %c0_98, %c0_99] : memref<2x128x512xf32, #tpu.memory_space<vmem>>, vector<1x128x512xf32>
      %328 = vector.shape_cast %327 : vector<1x128x512xf32> to vector<128x512xf32>
      %cst_100 = arith.constant dense<0.000000e+00> : vector<64x512xf32>
      %329 = tpu.matmul %325, %328, %cst_100 {dimension_numbers = #tpu.dot_dimension_numbers<[1], [0], [0], [1], [0, 0, 1, 1], [], []>} : vector<64x128xf32>, vector<128x512xf32>, vector<64x512xf32> -> vector<64x512xf32>
      %330 = vector.shape_cast %329 : vector<64x512xf32> to vector<8x8x512xf32>
      %331 = arith.index_cast %arg1 : i32 to index
      %c0_101 = arith.constant 0 : index
      %c0_102 = arith.constant 0 : index
      %332 = vector.load %arg5[%331, %c0_101, %c0_102] : memref<2x1x512xf32, #tpu.memory_space<vmem>>, vector<1x1x512xf32>
      %333 = vector.shape_cast %332 : vector<1x1x512xf32> to vector<1x512xf32>
      %334 = vector.shape_cast %333 : vector<1x512xf32> to vector<1x1x512xf32>
      %335 = vector.broadcast %334 : vector<1x1x512xf32> to vector<8x8x512xf32>
      %336 = arith.addf %330, %335 : vector<8x8x512xf32>
      %c0_103 = arith.constant 0 : index
      %c0_104 = arith.constant 0 : index
      %c0_105 = arith.constant 0 : index
      %337 = vector.load %arg8[%c0_103, %c0_104, %c0_105] : memref<8x8x512xf32, #tpu.memory_space<vmem>>, vector<8x8x512xf32>
      tpu.vector_store %arg8[%c0_103, %c0_104, %c0_105], %336 {strides = array<i32>} : memref<8x8x512xf32, #tpu.memory_space<vmem>>, vector<8x8x512xf32>,
    } else {
    }
    %9 = arith.index_cast %arg1 : i32 to index
    %c0 = arith.constant 0 : index
    %c0_5 = arith.constant 0 : index
    %10 = vector.load %arg10[%9, %c0, %c0_5] : memref<2x8x128xf32, #tpu.memory_space<vmem>>, vector<1x8x128xf32>
    %11 = vector.shape_cast %10 : vector<1x8x128xf32> to vector<8x128xf32>
    %12 = arith.index_cast %arg1 : i32 to index
    %c0_6 = arith.constant 0 : index
    %c0_7 = arith.constant 0 : index
    %13 = vector.load %arg11[%12, %c0_6, %c0_7] : memref<2x8x128xf32, #tpu.memory_space<vmem>>, vector<1x8x128xf32>
    %14 = vector.shape_cast %13 : vector<1x8x128xf32> to vector<8x128xf32>
    %c0_i32_8 = arith.constant 0 : i32
    %15 = arith.index_cast %c0_i32_8 : i32 to index
    %c0_9 = arith.constant 0 : index
    %c0_10 = arith.constant 0 : index
    %16 = vector.load %arg8[%15, %c0_9, %c0_10] : memref<8x8x512xf32, #tpu.memory_space<vmem>>, vector<1x8x512xf32>
    %17 = vector.shape_cast %16 : vector<1x8x512xf32> to vector<8x512xf32>
    %18 = arith.index_cast %arg1 : i32 to index
    %c0_11 = arith.constant 0 : index
    %c0_12 = arith.constant 0 : index
    %19 = vector.load %arg4[%18, %c0_11, %c0_12] : memref<2x128x512xf32, #tpu.memory_space<vmem>>, vector<1x128x512xf32>
    %20 = vector.shape_cast %19 : vector<1x128x512xf32> to vector<128x512xf32>
    %cst = arith.constant dense<0.000000e+00> : vector<8x512xf32>
    %21 = tpu.matmul %11, %20, %cst {dimension_numbers = #tpu.dot_dimension_numbers<[1], [0], [0], [1], [0, 0, 1, 1], [], []>} : vector<8x128xf32>, vector<128x512xf32>, vector<8x512xf32> -> vector<8x512xf32>
    %22 = arith.addf %17, %21 : vector<8x512xf32>
    %23 = vector.extract_strided_slice %22 {offsets = [0, 0], sizes = [8, 128], strides = [1, 1]} : vector<8x512xf32> to vector<8x128xf32>
    %24 = arith.negf %23 : vector<8x128xf32>
    %25 = math.exp %24 : vector<8x128xf32>
    %cst_13 = arith.constant 1.000000e+00 : f32
    %26 = vector.broadcast %cst_13 : f32 to vector<8x128xf32>
    %27 = arith.addf %26, %25 : vector<8x128xf32>
    %28 = arith.divf %26, %27 : vector<8x128xf32>
    %29 = vector.extract_strided_slice %22 {offsets = [0, 128], sizes = [8, 128], strides = [1, 1]} : vector<8x512xf32> to vector<8x128xf32>
    %30 = arith.negf %29 : vector<8x128xf32>
    %31 = math.exp %30 : vector<8x128xf32>
    %cst_14 = arith.constant 1.000000e+00 : f32
    %32 = vector.broadcast %cst_14 : f32 to vector<8x128xf32>
    %33 = arith.addf %32, %31 : vector<8x128xf32>
    %34 = arith.divf %32, %33 : vector<8x128xf32>
    %35 = vector.extract_strided_slice %22 {offsets = [0, 256], sizes = [8, 128], strides = [1, 1]} : vector<8x512xf32> to vector<8x128xf32>
    %36 = math.tanh %35 : vector<8x128xf32>
    %37 = vector.extract_strided_slice %22 {offsets = [0, 384], sizes = [8, 128], strides = [1, 1]} : vector<8x512xf32> to vector<8x128xf32>
    %38 = arith.negf %37 : vector<8x128xf32>
    %39 = math.exp %38 : vector<8x128xf32>
    %cst_15 = arith.constant 1.000000e+00 : f32
    %40 = vector.broadcast %cst_15 : f32 to vector<8x128xf32>
    %41 = arith.addf %40, %39 : vector<8x128xf32>
    %42 = arith.divf %40, %41 : vector<8x128xf32>
    %43 = arith.mulf %34, %14 : vector<8x128xf32>
    %44 = arith.mulf %28, %36 : vector<8x128xf32>
    %45 = arith.addf %43, %44 : vector<8x128xf32>
    %46 = math.tanh %45 : vector<8x128xf32>
    %47 = arith.mulf %42, %46 : vector<8x128xf32>
    %48 = arith.index_cast %c0_i32_8 : i32 to index
    %c0_16 = arith.constant 0 : index
    %c0_17 = arith.constant 0 : index
    %49 = vector.load %arg9[%48, %c0_16, %c0_17] : memref<8x8x128xf32, #tpu.memory_space<vmem>>, vector<1x8x128xf32>
    %50 = vector.shape_cast %49 : vector<1x8x128xf32> to vector<8x128xf32>
    %51 = vector.shape_cast %47 : vector<8x128xf32> to vector<1x8x128xf32>
    tpu.vector_store %arg9[%48, %c0_16, %c0_17], %51 {strides = array<i32>} : memref<8x8x128xf32, #tpu.memory_space<vmem>>, vector<1x8x128xf32>,
    %c1_i32 = arith.constant 1 : i32
    %52 = arith.index_cast %c1_i32 : i32 to index
    %c0_18 = arith.constant 0 : index
    %c0_19 = arith.constant 0 : index
    %53 = vector.load %arg8[%52, %c0_18, %c0_19] : memref<8x8x512xf32, #tpu.memory_space<vmem>>, vector<1x8x512xf32>
    %54 = vector.shape_cast %53 : vector<1x8x512xf32> to vector<8x512xf32>
    %55 = arith.index_cast %arg1 : i32 to index
    %c0_20 = arith.constant 0 : index
    %c0_21 = arith.constant 0 : index
    %56 = vector.load %arg4[%55, %c0_20, %c0_21] : memref<2x128x512xf32, #tpu.memory_space<vmem>>, vector<1x128x512xf32>
    %57 = vector.shape_cast %56 : vector<1x128x512xf32> to vector<128x512xf32>
    %cst_22 = arith.constant dense<0.000000e+00> : vector<8x512xf32>
    %58 = tpu.matmul %47, %57, %cst_22 {dimension_numbers = #tpu.dot_dimension_numbers<[1], [0], [0], [1], [0, 0, 1, 1], [], []>} : vector<8x128xf32>, vector<128x512xf32>, vector<8x512xf32> -> vector<8x512xf32>
    %59 = arith.addf %54, %58 : vector<8x512xf32>
    %60 = vector.extract_strided_slice %59 {offsets = [0, 0], sizes = [8, 128], strides = [1, 1]} : vector<8x512xf32> to vector<8x128xf32>
    %61 = arith.negf %60 : vector<8x128xf32>
    %62 = math.exp %61 : vector<8x128xf32>
    %cst_23 = arith.constant 1.000000e+00 : f32
    %63 = vector.broadcast %cst_23 : f32 to vector<8x128xf32>
    %64 = arith.addf %63, %62 : vector<8x128xf32>
    %65 = arith.divf %63, %64 : vector<8x128xf32>
    %66 = vector.extract_strided_slice %59 {offsets = [0, 128], sizes = [8, 128], strides = [1, 1]} : vector<8x512xf32> to vector<8x128xf32>
    %67 = arith.negf %66 : vector<8x128xf32>
    %68 = math.exp %67 : vector<8x128xf32>
    %cst_24 = arith.constant 1.000000e+00 : f32
    %69 = vector.broadcast %cst_24 : f32 to vector<8x128xf32>
    %70 = arith.addf %69, %68 : vector<8x128xf32>
    %71 = arith.divf %69, %70 : vector<8x128xf32>
    %72 = vector.extract_strided_slice %59 {offsets = [0, 256], sizes = [8, 128], strides = [1, 1]} : vector<8x512xf32> to vector<8x128xf32>
    %73 = math.tanh %72 : vector<8x128xf32>
    %74 = vector.extract_strided_slice %59 {offsets = [0, 384], sizes = [8, 128], strides = [1, 1]} : vector<8x512xf32> to vector<8x128xf32>
    %75 = arith.negf %74 : vector<8x128xf32>
    %76 = math.exp %75 : vector<8x128xf32>
    %cst_25 = arith.constant 1.000000e+00 : f32
    %77 = vector.broadcast %cst_25 : f32 to vector<8x128xf32>
    %78 = arith.addf %77, %76 : vector<8x128xf32>
    %79 = arith.divf %77, %78 : vector<8x128xf32>
    %80 = arith.mulf %71, %45 : vector<8x128xf32>
    %81 = arith.mulf %65, %73 : vector<8x128xf32>
    %82 = arith.addf %80, %81 : vector<8x128xf32>
    %83 = math.tanh %82 : vector<8x128xf32>
    %84 = arith.mulf %79, %83 : vector<8x128xf32>
    %85 = arith.index_cast %c1_i32 : i32 to index
    %c0_26 = arith.constant 0 : index
    %c0_27 = arith.constant 0 : index
    %86 = vector.load %arg9[%85, %c0_26, %c0_27] : memref<8x8x128xf32, #tpu.memory_space<vmem>>, vector<1x8x128xf32>
    %87 = vector.shape_cast %86 : vector<1x8x128xf32> to vector<8x128xf32>
    %88 = vector.shape_cast %84 : vector<8x128xf32> to vector<1x8x128xf32>
    tpu.vector_store %arg9[%85, %c0_26, %c0_27], %88 {strides = array<i32>} : memref<8x8x128xf32, #tpu.memory_space<vmem>>, vector<1x8x128xf32>,
    %c2_i32 = arith.constant 2 : i32
    %89 = arith.index_cast %c2_i32 : i32 to index
    %c0_28 = arith.constant 0 : index
    %c0_29 = arith.constant 0 : index
    %90 = vector.load %arg8[%89, %c0_28, %c0_29] : memref<8x8x512xf32, #tpu.memory_space<vmem>>, vector<1x8x512xf32>
    %91 = vector.shape_cast %90 : vector<1x8x512xf32> to vector<8x512xf32>
    %92 = arith.index_cast %arg1 : i32 to index
    %c0_30 = arith.constant 0 : index
    %c0_31 = arith.constant 0 : index
    %93 = vector.load %arg4[%92, %c0_30, %c0_31] : memref<2x128x512xf32, #tpu.memory_space<vmem>>, vector<1x128x512xf32>
    %94 = vector.shape_cast %93 : vector<1x128x512xf32> to vector<128x512xf32>
    %cst_32 = arith.constant dense<0.000000e+00> : vector<8x512xf32>
    %95 = tpu.matmul %84, %94, %cst_32 {dimension_numbers = #tpu.dot_dimension_numbers<[1], [0], [0], [1], [0, 0, 1, 1], [], []>} : vector<8x128xf32>, vector<128x512xf32>, vector<8x512xf32> -> vector<8x512xf32>
    %96 = arith.addf %91, %95 : vector<8x512xf32>
    %97 = vector.extract_strided_slice %96 {offsets = [0, 0], sizes = [8, 128], strides = [1, 1]} : vector<8x512xf32> to vector<8x128xf32>
    %98 = arith.negf %97 : vector<8x128xf32>
    %99 = math.exp %98 : vector<8x128xf32>
    %cst_33 = arith.constant 1.000000e+00 : f32
    %100 = vector.broadcast %cst_33 : f32 to vector<8x128xf32>
    %101 = arith.addf %100, %99 : vector<8x128xf32>
    %102 = arith.divf %100, %101 : vector<8x128xf32>
    %103 = vector.extract_strided_slice %96 {offsets = [0, 128], sizes = [8, 128], strides = [1, 1]} : vector<8x512xf32> to vector<8x128xf32>
    %104 = arith.negf %103 : vector<8x128xf32>
    %105 = math.exp %104 : vector<8x128xf32>
    %cst_34 = arith.constant 1.000000e+00 : f32
    %106 = vector.broadcast %cst_34 : f32 to vector<8x128xf32>
    %107 = arith.addf %106, %105 : vector<8x128xf32>
    %108 = arith.divf %106, %107 : vector<8x128xf32>
    %109 = vector.extract_strided_slice %96 {offsets = [0, 256], sizes = [8, 128], strides = [1, 1]} : vector<8x512xf32> to vector<8x128xf32>
    %110 = math.tanh %109 : vector<8x128xf32>
    %111 = vector.extract_strided_slice %96 {offsets = [0, 384], sizes = [8, 128], strides = [1, 1]} : vector<8x512xf32> to vector<8x128xf32>
    %112 = arith.negf %111 : vector<8x128xf32>
    %113 = math.exp %112 : vector<8x128xf32>
    %cst_35 = arith.constant 1.000000e+00 : f32
    %114 = vector.broadcast %cst_35 : f32 to vector<8x128xf32>
    %115 = arith.addf %114, %113 : vector<8x128xf32>
    %116 = arith.divf %114, %115 : vector<8x128xf32>
    %117 = arith.mulf %108, %82 : vector<8x128xf32>
    %118 = arith.mulf %102, %110 : vector<8x128xf32>
    %119 = arith.addf %117, %118 : vector<8x128xf32>
    %120 = math.tanh %119 : vector<8x128xf32>
    %121 = arith.mulf %116, %120 : vector<8x128xf32>
    %122 = arith.index_cast %c2_i32 : i32 to index
    %c0_36 = arith.constant 0 : index
    %c0_37 = arith.constant 0 : index
    %123 = vector.load %arg9[%122, %c0_36, %c0_37] : memref<8x8x128xf32, #tpu.memory_space<vmem>>, vector<1x8x128xf32>
    %124 = vector.shape_cast %123 : vector<1x8x128xf32> to vector<8x128xf32>
    %125 = vector.shape_cast %121 : vector<8x128xf32> to vector<1x8x128xf32>
    tpu.vector_store %arg9[%122, %c0_36, %c0_37], %125 {strides = array<i32>} : memref<8x8x128xf32, #tpu.memory_space<vmem>>, vector<1x8x128xf32>,
    %c3_i32 = arith.constant 3 : i32
    %126 = arith.index_cast %c3_i32 : i32 to index
    %c0_38 = arith.constant 0 : index
    %c0_39 = arith.constant 0 : index
    %127 = vector.load %arg8[%126, %c0_38, %c0_39] : memref<8x8x512xf32, #tpu.memory_space<vmem>>, vector<1x8x512xf32>
    %128 = vector.shape_cast %127 : vector<1x8x512xf32> to vector<8x512xf32>
    %129 = arith.index_cast %arg1 : i32 to index
    %c0_40 = arith.constant 0 : index
    %c0_41 = arith.constant 0 : index
    %130 = vector.load %arg4[%129, %c0_40, %c0_41] : memref<2x128x512xf32, #tpu.memory_space<vmem>>, vector<1x128x512xf32>
    %131 = vector.shape_cast %130 : vector<1x128x512xf32> to vector<128x512xf32>
    %cst_42 = arith.constant dense<0.000000e+00> : vector<8x512xf32>
    %132 = tpu.matmul %121, %131, %cst_42 {dimension_numbers = #tpu.dot_dimension_numbers<[1], [0], [0], [1], [0, 0, 1, 1], [], []>} : vector<8x128xf32>, vector<128x512xf32>, vector<8x512xf32> -> vector<8x512xf32>
    %133 = arith.addf %128, %132 : vector<8x512xf32>
    %134 = vector.extract_strided_slice %133 {offsets = [0, 0], sizes = [8, 128], strides = [1, 1]} : vector<8x512xf32> to vector<8x128xf32>
    %135 = arith.negf %134 : vector<8x128xf32>
    %136 = math.exp %135 : vector<8x128xf32>
    %cst_43 = arith.constant 1.000000e+00 : f32
    %137 = vector.broadcast %cst_43 : f32 to vector<8x128xf32>
    %138 = arith.addf %137, %136 : vector<8x128xf32>
    %139 = arith.divf %137, %138 : vector<8x128xf32>
    %140 = vector.extract_strided_slice %133 {offsets = [0, 128], sizes = [8, 128], strides = [1, 1]} : vector<8x512xf32> to vector<8x128xf32>
    %141 = arith.negf %140 : vector<8x128xf32>
    %142 = math.exp %141 : vector<8x128xf32>
    %cst_44 = arith.constant 1.000000e+00 : f32
    %143 = vector.broadcast %cst_44 : f32 to vector<8x128xf32>
    %144 = arith.addf %143, %142 : vector<8x128xf32>
    %145 = arith.divf %143, %144 : vector<8x128xf32>
    %146 = vector.extract_strided_slice %133 {offsets = [0, 256], sizes = [8, 128], strides = [1, 1]} : vector<8x512xf32> to vector<8x128xf32>
    %147 = math.tanh %146 : vector<8x128xf32>
    %148 = vector.extract_strided_slice %133 {offsets = [0, 384], sizes = [8, 128], strides = [1, 1]} : vector<8x512xf32> to vector<8x128xf32>
    %149 = arith.negf %148 : vector<8x128xf32>
    %150 = math.exp %149 : vector<8x128xf32>
    %cst_45 = arith.constant 1.000000e+00 : f32
    %151 = vector.broadcast %cst_45 : f32 to vector<8x128xf32>
    %152 = arith.addf %151, %150 : vector<8x128xf32>
    %153 = arith.divf %151, %152 : vector<8x128xf32>
    %154 = arith.mulf %145, %119 : vector<8x128xf32>
    %155 = arith.mulf %139, %147 : vector<8x128xf32>
    %156 = arith.addf %154, %155 : vector<8x128xf32>
    %157 = math.tanh %156 : vector<8x128xf32>
    %158 = arith.mulf %153, %157 : vector<8x128xf32>
    %159 = arith.index_cast %c3_i32 : i32 to index
    %c0_46 = arith.constant 0 : index
    %c0_47 = arith.constant 0 : index
    %160 = vector.load %arg9[%159, %c0_46, %c0_47] : memref<8x8x128xf32, #tpu.memory_space<vmem>>, vector<1x8x128xf32>
    %161 = vector.shape_cast %160 : vector<1x8x128xf32> to vector<8x128xf32>
    %162 = vector.shape_cast %158 : vector<8x128xf32> to vector<1x8x128xf32>
    tpu.vector_store %arg9[%159, %c0_46, %c0_47], %162 {strides = array<i32>} : memref<8x8x128xf32, #tpu.memory_space<vmem>>, vector<1x8x128xf32>,
    %c4_i32 = arith.constant 4 : i32
    %163 = arith.index_cast %c4_i32 : i32 to index
    %c0_48 = arith.constant 0 : index
    %c0_49 = arith.constant 0 : index
    %164 = vector.load %arg8[%163, %c0_48, %c0_49] : memref<8x8x512xf32, #tpu.memory_space<vmem>>, vector<1x8x512xf32>
    %165 = vector.shape_cast %164 : vector<1x8x512xf32> to vector<8x512xf32>
    %166 = arith.index_cast %arg1 : i32 to index
    %c0_50 = arith.constant 0 : index
    %c0_51 = arith.constant 0 : index
    %167 = vector.load %arg4[%166, %c0_50, %c0_51] : memref<2x128x512xf32, #tpu.memory_space<vmem>>, vector<1x128x512xf32>
    %168 = vector.shape_cast %167 : vector<1x128x512xf32> to vector<128x512xf32>
    %cst_52 = arith.constant dense<0.000000e+00> : vector<8x512xf32>
    %169 = tpu.matmul %158, %168, %cst_52 {dimension_numbers = #tpu.dot_dimension_numbers<[1], [0], [0], [1], [0, 0, 1, 1], [], []>} : vector<8x128xf32>, vector<128x512xf32>, vector<8x512xf32> -> vector<8x512xf32>
    %170 = arith.addf %165, %169 : vector<8x512xf32>
    %171 = vector.extract_strided_slice %170 {offsets = [0, 0], sizes = [8, 128], strides = [1, 1]} : vector<8x512xf32> to vector<8x128xf32>
    %172 = arith.negf %171 : vector<8x128xf32>
    %173 = math.exp %172 : vector<8x128xf32>
    %cst_53 = arith.constant 1.000000e+00 : f32
    %174 = vector.broadcast %cst_53 : f32 to vector<8x128xf32>
    %175 = arith.addf %174, %173 : vector<8x128xf32>
    %176 = arith.divf %174, %175 : vector<8x128xf32>
    %177 = vector.extract_strided_slice %170 {offsets = [0, 128], sizes = [8, 128], strides = [1, 1]} : vector<8x512xf32> to vector<8x128xf32>
    %178 = arith.negf %177 : vector<8x128xf32>
    %179 = math.exp %178 : vector<8x128xf32>
    %cst_54 = arith.constant 1.000000e+00 : f32
    %180 = vector.broadcast %cst_54 : f32 to vector<8x128xf32>
    %181 = arith.addf %180, %179 : vector<8x128xf32>
    %182 = arith.divf %180, %181 : vector<8x128xf32>
    %183 = vector.extract_strided_slice %170 {offsets = [0, 256], sizes = [8, 128], strides = [1, 1]} : vector<8x512xf32> to vector<8x128xf32>
    %184 = math.tanh %183 : vector<8x128xf32>
    %185 = vector.extract_strided_slice %170 {offsets = [0, 384], sizes = [8, 128], strides = [1, 1]} : vector<8x512xf32> to vector<8x128xf32>
    %186 = arith.negf %185 : vector<8x128xf32>
    %187 = math.exp %186 : vector<8x128xf32>
    %cst_55 = arith.constant 1.000000e+00 : f32
    %188 = vector.broadcast %cst_55 : f32 to vector<8x128xf32>
    %189 = arith.addf %188, %187 : vector<8x128xf32>
    %190 = arith.divf %188, %189 : vector<8x128xf32>
    %191 = arith.mulf %182, %156 : vector<8x128xf32>
    %192 = arith.mulf %176, %184 : vector<8x128xf32>
    %193 = arith.addf %191, %192 : vector<8x128xf32>
    %194 = math.tanh %193 : vector<8x128xf32>
    %195 = arith.mulf %190, %194 : vector<8x128xf32>
    %196 = arith.index_cast %c4_i32 : i32 to index
    %c0_56 = arith.constant 0 : index
    %c0_57 = arith.constant 0 : index
    %197 = vector.load %arg9[%196, %c0_56, %c0_57] : memref<8x8x128xf32, #tpu.memory_space<vmem>>, vector<1x8x128xf32>
    %198 = vector.shape_cast %197 : vector<1x8x128xf32> to vector<8x128xf32>
    %199 = vector.shape_cast %195 : vector<8x128xf32> to vector<1x8x128xf32>
    tpu.vector_store %arg9[%196, %c0_56, %c0_57], %199 {strides = array<i32>} : memref<8x8x128xf32, #tpu.memory_space<vmem>>, vector<1x8x128xf32>,
    %c5_i32 = arith.constant 5 : i32
    %200 = arith.index_cast %c5_i32 : i32 to index
    %c0_58 = arith.constant 0 : index
    %c0_59 = arith.constant 0 : index
    %201 = vector.load %arg8[%200, %c0_58, %c0_59] : memref<8x8x512xf32, #tpu.memory_space<vmem>>, vector<1x8x512xf32>
    %202 = vector.shape_cast %201 : vector<1x8x512xf32> to vector<8x512xf32>
    %203 = arith.index_cast %arg1 : i32 to index
    %c0_60 = arith.constant 0 : index
    %c0_61 = arith.constant 0 : index
    %204 = vector.load %arg4[%203, %c0_60, %c0_61] : memref<2x128x512xf32, #tpu.memory_space<vmem>>, vector<1x128x512xf32>
    %205 = vector.shape_cast %204 : vector<1x128x512xf32> to vector<128x512xf32>
    %cst_62 = arith.constant dense<0.000000e+00> : vector<8x512xf32>
    %206 = tpu.matmul %195, %205, %cst_62 {dimension_numbers = #tpu.dot_dimension_numbers<[1], [0], [0], [1], [0, 0, 1, 1], [], []>} : vector<8x128xf32>, vector<128x512xf32>, vector<8x512xf32> -> vector<8x512xf32>
    %207 = arith.addf %202, %206 : vector<8x512xf32>
    %208 = vector.extract_strided_slice %207 {offsets = [0, 0], sizes = [8, 128], strides = [1, 1]} : vector<8x512xf32> to vector<8x128xf32>
    %209 = arith.negf %208 : vector<8x128xf32>
    %210 = math.exp %209 : vector<8x128xf32>
    %cst_63 = arith.constant 1.000000e+00 : f32
    %211 = vector.broadcast %cst_63 : f32 to vector<8x128xf32>
    %212 = arith.addf %211, %210 : vector<8x128xf32>
    %213 = arith.divf %211, %212 : vector<8x128xf32>
    %214 = vector.extract_strided_slice %207 {offsets = [0, 128], sizes = [8, 128], strides = [1, 1]} : vector<8x512xf32> to vector<8x128xf32>
    %215 = arith.negf %214 : vector<8x128xf32>
    %216 = math.exp %215 : vector<8x128xf32>
    %cst_64 = arith.constant 1.000000e+00 : f32
    %217 = vector.broadcast %cst_64 : f32 to vector<8x128xf32>
    %218 = arith.addf %217, %216 : vector<8x128xf32>
    %219 = arith.divf %217, %218 : vector<8x128xf32>
    %220 = vector.extract_strided_slice %207 {offsets = [0, 256], sizes = [8, 128], strides = [1, 1]} : vector<8x512xf32> to vector<8x128xf32>
    %221 = math.tanh %220 : vector<8x128xf32>
    %222 = vector.extract_strided_slice %207 {offsets = [0, 384], sizes = [8, 128], strides = [1, 1]} : vector<8x512xf32> to vector<8x128xf32>
    %223 = arith.negf %222 : vector<8x128xf32>
    %224 = math.exp %223 : vector<8x128xf32>
    %cst_65 = arith.constant 1.000000e+00 : f32
    %225 = vector.broadcast %cst_65 : f32 to vector<8x128xf32>
    %226 = arith.addf %225, %224 : vector<8x128xf32>
    %227 = arith.divf %225, %226 : vector<8x128xf32>
    %228 = arith.mulf %219, %193 : vector<8x128xf32>
    %229 = arith.mulf %213, %221 : vector<8x128xf32>
    %230 = arith.addf %228, %229 : vector<8x128xf32>
    %231 = math.tanh %230 : vector<8x128xf32>
    %232 = arith.mulf %227, %231 : vector<8x128xf32>
    %233 = arith.index_cast %c5_i32 : i32 to index
    %c0_66 = arith.constant 0 : index
    %c0_67 = arith.constant 0 : index
    %234 = vector.load %arg9[%233, %c0_66, %c0_67] : memref<8x8x128xf32, #tpu.memory_space<vmem>>, vector<1x8x128xf32>
    %235 = vector.shape_cast %234 : vector<1x8x128xf32> to vector<8x128xf32>
    %236 = vector.shape_cast %232 : vector<8x128xf32> to vector<1x8x128xf32>
    tpu.vector_store %arg9[%233, %c0_66, %c0_67], %236 {strides = array<i32>} : memref<8x8x128xf32, #tpu.memory_space<vmem>>, vector<1x8x128xf32>,
    %c6_i32 = arith.constant 6 : i32
    %237 = arith.index_cast %c6_i32 : i32 to index
    %c0_68 = arith.constant 0 : index
    %c0_69 = arith.constant 0 : index
    %238 = vector.load %arg8[%237, %c0_68, %c0_69] : memref<8x8x512xf32, #tpu.memory_space<vmem>>, vector<1x8x512xf32>
    %239 = vector.shape_cast %238 : vector<1x8x512xf32> to vector<8x512xf32>
    %240 = arith.index_cast %arg1 : i32 to index
    %c0_70 = arith.constant 0 : index
    %c0_71 = arith.constant 0 : index
    %241 = vector.load %arg4[%240, %c0_70, %c0_71] : memref<2x128x512xf32, #tpu.memory_space<vmem>>, vector<1x128x512xf32>
    %242 = vector.shape_cast %241 : vector<1x128x512xf32> to vector<128x512xf32>
    %cst_72 = arith.constant dense<0.000000e+00> : vector<8x512xf32>
    %243 = tpu.matmul %232, %242, %cst_72 {dimension_numbers = #tpu.dot_dimension_numbers<[1], [0], [0], [1], [0, 0, 1, 1], [], []>} : vector<8x128xf32>, vector<128x512xf32>, vector<8x512xf32> -> vector<8x512xf32>
    %244 = arith.addf %239, %243 : vector<8x512xf32>
    %245 = vector.extract_strided_slice %244 {offsets = [0, 0], sizes = [8, 128], strides = [1, 1]} : vector<8x512xf32> to vector<8x128xf32>
    %246 = arith.negf %245 : vector<8x128xf32>
    %247 = math.exp %246 : vector<8x128xf32>
    %cst_73 = arith.constant 1.000000e+00 : f32
    %248 = vector.broadcast %cst_73 : f32 to vector<8x128xf32>
    %249 = arith.addf %248, %247 : vector<8x128xf32>
    %250 = arith.divf %248, %249 : vector<8x128xf32>
    %251 = vector.extract_strided_slice %244 {offsets = [0, 128], sizes = [8, 128], strides = [1, 1]} : vector<8x512xf32> to vector<8x128xf32>
    %252 = arith.negf %251 : vector<8x128xf32>
    %253 = math.exp %252 : vector<8x128xf32>
    %cst_74 = arith.constant 1.000000e+00 : f32
    %254 = vector.broadcast %cst_74 : f32 to vector<8x128xf32>
    %255 = arith.addf %254, %253 : vector<8x128xf32>
    %256 = arith.divf %254, %255 : vector<8x128xf32>
    %257 = vector.extract_strided_slice %244 {offsets = [0, 256], sizes = [8, 128], strides = [1, 1]} : vector<8x512xf32> to vector<8x128xf32>
    %258 = math.tanh %257 : vector<8x128xf32>
    %259 = vector.extract_strided_slice %244 {offsets = [0, 384], sizes = [8, 128], strides = [1, 1]} : vector<8x512xf32> to vector<8x128xf32>
    %260 = arith.negf %259 : vector<8x128xf32>
    %261 = math.exp %260 : vector<8x128xf32>
    %cst_75 = arith.constant 1.000000e+00 : f32
    %262 = vector.broadcast %cst_75 : f32 to vector<8x128xf32>
    %263 = arith.addf %262, %261 : vector<8x128xf32>
    %264 = arith.divf %262, %263 : vector<8x128xf32>
    %265 = arith.mulf %256, %230 : vector<8x128xf32>
    %266 = arith.mulf %250, %258 : vector<8x128xf32>
    %267 = arith.addf %265, %266 : vector<8x128xf32>
    %268 = math.tanh %267 : vector<8x128xf32>
    %269 = arith.mulf %264, %268 : vector<8x128xf32>
    %270 = arith.index_cast %c6_i32 : i32 to index
    %c0_76 = arith.constant 0 : index
    %c0_77 = arith.constant 0 : index
    %271 = vector.load %arg9[%270, %c0_76, %c0_77] : memref<8x8x128xf32, #tpu.memory_space<vmem>>, vector<1x8x128xf32>
    %272 = vector.shape_cast %271 : vector<1x8x128xf32> to vector<8x128xf32>
    %273 = vector.shape_cast %269 : vector<8x128xf32> to vector<1x8x128xf32>
    tpu.vector_store %arg9[%270, %c0_76, %c0_77], %273 {strides = array<i32>} : memref<8x8x128xf32, #tpu.memory_space<vmem>>, vector<1x8x128xf32>,
    %c7_i32 = arith.constant 7 : i32
    %274 = arith.index_cast %c7_i32 : i32 to index
    %c0_78 = arith.constant 0 : index
    %c0_79 = arith.constant 0 : index
    %275 = vector.load %arg8[%274, %c0_78, %c0_79] : memref<8x8x512xf32, #tpu.memory_space<vmem>>, vector<1x8x512xf32>
    %276 = vector.shape_cast %275 : vector<1x8x512xf32> to vector<8x512xf32>
    %277 = arith.index_cast %arg1 : i32 to index
    %c0_80 = arith.constant 0 : index
    %c0_81 = arith.constant 0 : index
    %278 = vector.load %arg4[%277, %c0_80, %c0_81] : memref<2x128x512xf32, #tpu.memory_space<vmem>>, vector<1x128x512xf32>
    %279 = vector.shape_cast %278 : vector<1x128x512xf32> to vector<128x512xf32>
    %cst_82 = arith.constant dense<0.000000e+00> : vector<8x512xf32>
    %280 = tpu.matmul %269, %279, %cst_82 {dimension_numbers = #tpu.dot_dimension_numbers<[1], [0], [0], [1], [0, 0, 1, 1], [], []>} : vector<8x128xf32>, vector<128x512xf32>, vector<8x512xf32> -> vector<8x512xf32>
    %281 = arith.addf %276, %280 : vector<8x512xf32>
    %282 = vector.extract_strided_slice %281 {offsets = [0, 0], sizes = [8, 128], strides = [1, 1]} : vector<8x512xf32> to vector<8x128xf32>
    %283 = arith.negf %282 : vector<8x128xf32>
    %284 = math.exp %283 : vector<8x128xf32>
    %cst_83 = arith.constant 1.000000e+00 : f32
    %285 = vector.broadcast %cst_83 : f32 to vector<8x128xf32>
    %286 = arith.addf %285, %284 : vector<8x128xf32>
    %287 = arith.divf %285, %286 : vector<8x128xf32>
    %288 = vector.extract_strided_slice %281 {offsets = [0, 128], sizes = [8, 128], strides = [1, 1]} : vector<8x512xf32> to vector<8x128xf32>
    %289 = arith.negf %288 : vector<8x128xf32>
    %290 = math.exp %289 : vector<8x128xf32>
    %cst_84 = arith.constant 1.000000e+00 : f32
    %291 = vector.broadcast %cst_84 : f32 to vector<8x128xf32>
    %292 = arith.addf %291, %290 : vector<8x128xf32>
    %293 = arith.divf %291, %292 : vector<8x128xf32>
    %294 = vector.extract_strided_slice %281 {offsets = [0, 256], sizes = [8, 128], strides = [1, 1]} : vector<8x512xf32> to vector<8x128xf32>
    %295 = math.tanh %294 : vector<8x128xf32>
    %296 = vector.extract_strided_slice %281 {offsets = [0, 384], sizes = [8, 128], strides = [1, 1]} : vector<8x512xf32> to vector<8x128xf32>
    %297 = arith.negf %296 : vector<8x128xf32>
    %298 = math.exp %297 : vector<8x128xf32>
    %cst_85 = arith.constant 1.000000e+00 : f32
    %299 = vector.broadcast %cst_85 : f32 to vector<8x128xf32>
    %300 = arith.addf %299, %298 : vector<8x128xf32>
    %301 = arith.divf %299, %300 : vector<8x128xf32>
    %302 = arith.mulf %293, %267 : vector<8x128xf32>
    %303 = arith.mulf %287, %295 : vector<8x128xf32>
    %304 = arith.addf %302, %303 : vector<8x128xf32>
    %305 = math.tanh %304 : vector<8x128xf32>
    %306 = arith.mulf %301, %305 : vector<8x128xf32>
    %307 = arith.index_cast %c7_i32 : i32 to index
    %c0_86 = arith.constant 0 : index
    %c0_87 = arith.constant 0 : index
    %308 = vector.load %arg9[%307, %c0_86, %c0_87] : memref<8x8x128xf32, #tpu.memory_space<vmem>>, vector<1x8x128xf32>
    %309 = vector.shape_cast %308 : vector<1x8x128xf32> to vector<8x128xf32>
    %310 = vector.shape_cast %306 : vector<8x128xf32> to vector<1x8x128xf32>
    tpu.vector_store %arg9[%307, %c0_86, %c0_87], %310 {strides = array<i32>} : memref<8x8x128xf32, #tpu.memory_space<vmem>>, vector<1x8x128xf32>,
    %c8_i32 = arith.constant 8 : i32
    %311 = arith.index_cast %arg1 : i32 to index
    %c0_88 = arith.constant 0 : index
    %c0_89 = arith.constant 0 : index
    %312 = vector.load %arg10[%311, %c0_88, %c0_89] : memref<2x8x128xf32, #tpu.memory_space<vmem>>, vector<1x8x128xf32>
    %313 = vector.shape_cast %312 : vector<1x8x128xf32> to vector<8x128xf32>
    %314 = vector.shape_cast %306 : vector<8x128xf32> to vector<1x8x128xf32>
    tpu.vector_store %arg10[%311, %c0_88, %c0_89], %314 {strides = array<i32>} : memref<2x8x128xf32, #tpu.memory_space<vmem>>, vector<1x8x128xf32>,
    %315 = arith.index_cast %arg1 : i32 to index
    %c0_90 = arith.constant 0 : index
    %c0_91 = arith.constant 0 : index
    %316 = vector.load %arg11[%315, %c0_90, %c0_91] : memref<2x8x128xf32, #tpu.memory_space<vmem>>, vector<1x8x128xf32>
    %317 = vector.shape_cast %316 : vector<1x8x128xf32> to vector<8x128xf32>
    %318 = vector.shape_cast %304 : vector<8x128xf32> to vector<1x8x128xf32>
    tpu.vector_store %arg11[%315, %c0_90, %c0_91], %318 {strides = array<i32>} : memref<2x8x128xf32, #tpu.memory_space<vmem>>, vector<1x8x128xf32>,
    %c0_i32_92 = arith.constant 0 : i32
    %319 = arith.cmpi eq, %arg0, %c0_i32_92 : i32
    %c1_i32_93 = arith.constant 1 : i32
    %320 = arith.cmpi eq, %arg1, %c1_i32_93 : i32
    %321 = arith.andi %319, %320 : i1
    %322 = arith.extui %321 : i1 to i32
    %c0_i32_94 = arith.constant 0 : i32
    %323 = arith.cmpi ne, %322, %c0_i32_94 : i32
    scf.if %323 {
      %c0_95 = arith.constant 0 : index
      %c0_96 = arith.constant 0 : index
      %324 = vector.load %arg6[%c0_95, %c0_96] : memref<1x128xf32, #tpu.memory_space<vmem>>, vector<1x128xf32>
      %325 = vector.broadcast %324 : vector<1x128xf32> to vector<8x128xf32>
      %326 = arith.mulf %306, %325 : vector<8x128xf32>
      %cst_97 = arith.constant dense<0.000000e+00> : vector<8xf32>
      %327 = vector.multi_reduction <add>, %326, %cst_97 [1] : vector<8x128xf32> to vector<8xf32>
      %328 = vector.shape_cast %327 : vector<8xf32> to vector<8x1xf32>
      %c0_98 = arith.constant 0 : index
      %c0_99 = arith.constant 0 : index
      %329 = vector.load %arg7[%c0_98, %c0_99] : memref<8x1xf32, #tpu.memory_space<vmem>>, vector<8x1xf32>
      tpu.vector_store %arg7[%c0_98, %c0_99], %328 {strides = array<i32>} : memref<8x1xf32, #tpu.memory_space<vmem>>, vector<8x1xf32>,
    } else {
    }
    return
  }
  func.func @transform_0(%arg0: i32, %arg1: i32) -> (i32, i32, i32) {
    %c0_i32 = arith.constant 0 : i32
    %c0_i32_0 = arith.constant 0 : i32
    %c0_i32_1 = arith.constant 0 : i32
    return %arg0, %c0_i32, %c0_i32_0 : i32, i32, i32
  }
  func.func @transform_1(%arg0: i32, %arg1: i32) -> (i32, i32, i32) {
    %c0_i32 = arith.constant 0 : i32
    %c0_i32_0 = arith.constant 0 : i32
    %c0_i32_1 = arith.constant 0 : i32
    %c0_i32_2 = arith.constant 0 : i32
    return %c0_i32, %c0_i32_0, %c0_i32_1 : i32, i32, i32
  }
  func.func @transform_2(%arg0: i32, %arg1: i32) -> (i32, i32, i32) {
    %c0_i32 = arith.constant 0 : i32
    %c0_i32_0 = arith.constant 0 : i32
    %c0_i32_1 = arith.constant 0 : i32
    %c0_i32_2 = arith.constant 0 : i32
    return %c0_i32, %c0_i32_0, %c0_i32_1 : i32, i32, i32
  }
  func.func @transform_3(%arg0: i32, %arg1: i32) -> (i32, i32, i32) {
    %c0_i32 = arith.constant 0 : i32
    %c0_i32_0 = arith.constant 0 : i32
    %c0_i32_1 = arith.constant 0 : i32
    %c0_i32_2 = arith.constant 0 : i32
    return %c0_i32, %c0_i32_0, %c0_i32_1 : i32, i32, i32
  }
  func.func @transform_4(%arg0: i32, %arg1: i32) -> (i32, i32) {
    %c0_i32 = arith.constant 0 : i32
    %c0_i32_0 = arith.constant 0 : i32
    %c0_i32_1 = arith.constant 0 : i32
    return %c0_i32, %c0_i32_0 : i32, i32
  }
  func.func @transform_5(%arg0: i32, %arg1: i32) -> (i32, i32) {
    %c0_i32 = arith.constant 0 : i32
    %c0_i32_0 = arith.constant 0 : i32
    %c0_i32_1 = arith.constant 0 : i32
    return %c0_i32, %c0_i32_0 : i32, i32
  }
}

</mosaic_0001>

<bundles_post_ra>
// kernel: lstm_model_forward.1
= control target key start
LH: loop header
LB: loop body
LE: loop exit
PB: predicated region body
PF: predicated region fallthrough
CT: control target
= control target key end

     0   :  { %10 = vsyncpa [#allocation7], 0  ;;  %s4696_s0 = inlined_call_operand.vmem [shape: f32[8,8,512], index: 0, kind: input, shape index: {}]   ;;  %s4697_s1 = inlined_call_operand.hbm [shape: f32[2,128,512], index: 1, kind: input, shape index: {}]   ;;  %s4698_s2 = inlined_call_operand.hbm [shape: f32[2,128,512], index: 2, kind: input, shape index: {}]   ;;  %s4699_s3 = inlined_call_operand.vmem [shape: f32[2,1,512], index: 3, kind: input, shape index: {}]   ;;  %s4700_s4 = inlined_call_operand.vmem [shape: f32[1,128], index: 4, kind: input, shape index: {}]   ;;  %s4701_s5 = inlined_call_operand.vmem [shape: f32[8,1], index: 5, kind: output, shape index: {}]  }
   0x1   :  { %11 = vsyncpa [#allocation9], 0  ;;  %s3740_s18 = smov 0   ;;  %s3742_s19 = smov 0  }
   0x2   :  { %s3744_s20 = smov 0  }
   0x3 LB: > { %s2814_s21 = sadd.s32 4294967295, %s3702_s20   ;;  %s26_s22 = sadd.s32 1, %s3698_s19  ;;  %s3702_s20 = sphi %s3744_s20, %s17_s20   ;;  %s3698_s19 = sphi %s3742_s19, %s4711_s19   ;;  %s3694_s18 = sphi %s3740_s18, %s4710_s18  }
   0x4   : > { %p27_p0 = scmp.ge.s32.totalorder %s26_s22, 2  ;;  %p2815_p1 = scmp.ge.s32.totalorder %s3702_s20, 1 }
   0x5   : > { %p165_p2 = scmp.lt.s32.totalorder %s3702_s20, 3  ;;  %p3765_p4 = scmp.eq.s32.totalorder %s2814_s21, 0 }
   0x6   : > { %s4713_s22 = smov (%p27_p0, %s26_s22), 0  ;;  %s3704_s25 = smov [#allocation6]  }
   0x7   : > { %p3761_p3 = pnand %p2815_p1, %p165_p2  ;;  %s187_s26 = sshll.u32 %s3704_s25, 4  ;;  %s188_s26 = int_to_ptr.vmem [resolvable:$true] %s187_s26 }
   0x8   : > { %s4706_s24 = scalar_select %p3765_p4, 1, 0 }
   0x9   : > { %s4705_s23 = scalar_select %p3761_p3, 1, 0 }
   0xa   : > { %p3447_p5 = pneg %p3761_p3  ;;  %s3705_s28 = smov [#allocation8]  }
   0xb   : > { %s200_s29 = sshll.u32 %s3705_s28, 4  ;;  %s3616_s7 = scalar_lea.hbm %s4697_s1, 16384  ;;  %s3777_s29 = int_to_ptr.vmem [resolvable:$true] %s200_s29 }
   0xc   : > { %p3773_p6 = pnand %p3765_p4, %p3447_p5  ;;  %p3617_p7 = scmp.ne.s32.totalorder %s4697_s1, %s3616_s7 }
   0xd   : > { %p3623_p11 = scmp.lt.u32.totalorder %s3616_s7, %s4697_s1 }
   0xe   : > { %p3618_p8 = pneg %p3773_p6 }
  0x10   : > { %p3619_p9 = pnand %p3618_p8, %p3617_p7 }
  0x12   : > { %p3620_p10 = pneg %p3619_p9 }
  0x14   : > { %p3625_p12 = pnand %p3623_p11, %p3620_p10 }
  0x16   : > { %3628 = shalt.err (!%p3625_p12)
}
  0x17   : > { %s3629_s12 = scalar_lea.vmem %s188_s26, 16384  ;;  %p3637_p2 = scmp.lt.s32.totalorder %s188_s26, %s188_s26 }
  0x18   : > { %p3630_p13 = scmp.ne.s32.totalorder %s188_s26, %s3629_s12  ;;  %p3638_p5 = scmp.lt.s32.totalorder %s3629_s12, %s3629_s12 }
  0x1a   : > { %p3632_p0 = pnand %p3630_p13, %p3618_p8  ;;  %p3639_p4 = por %p3638_p5, %p3637_p2 }
  0x1c   : > { %p3633_p1 = pneg %p3632_p0 }
  0x1e   : > { %p3640_p3 = pnand %p3639_p4, %p3633_p1 }
  0x20   : > { %3643 = shalt.err (!%p3640_p3)
}
  0x21   : > { %s3706_s13 = smov 512   ;;  %s3707_s14 = smov 32  }
  0x22   : > { %3450 = dma.hbm_to_vmem [thread:$0]  (!%p3773_p6), %s4697_s1, 16384, %s188_s26, [#allocation7], %s3706_s13, %s3706_s13, %s3707_s14  }
  0x23   : > { %s3644_s25 = scalar_lea.hbm %s4698_s2, 16384 }
  0x24   : > { %p3645_p7 = scmp.ne.s32.totalorder %s4698_s2, %s3644_s25  ;;  %p3651_p9 = scmp.lt.u32.totalorder %s3644_s25, %s4698_s2 }
  0x26   : > { %p3647_p3 = pnand %p3645_p7, %p3618_p8 }
  0x28   : > { %p3648_p4 = pneg %p3647_p3 }
  0x2a   : > { %p3653_p10 = pnand %p3651_p9, %p3648_p4 }
  0x2c   : > { %3656 = shalt.err (!%p3653_p10)
}
  0x2d   : > { %s3657_s26 = scalar_lea.vmem %s3777_s29, 16384  ;;  %p3665_p0 = scmp.lt.s32.totalorder %s3777_s29, %s3777_s29 }
  0x2e   : > { %p3658_p11 = scmp.ne.s32.totalorder %s3777_s29, %s3657_s26  ;;  %p3666_p1 = scmp.lt.s32.totalorder %s3657_s26, %s3657_s26 }
  0x30   : > { %p3660_p12 = pnand %p3658_p11, %p3618_p8  ;;  %p3667_p2 = por %p3666_p1, %p3665_p0 }
  0x32   : > { %p3661_p13 = pneg %p3660_p12 }
  0x34   : > { %p3668_p5 = pnand %p3667_p2, %p3661_p13 }
  0x36   : > { %3671 = shalt.err (!%p3668_p5)
}
  0x37   : > { %3453 = dma.hbm_to_vmem [thread:$0]  (!%p3773_p6), %s4698_s2, 16384, %s3777_s29, [#allocation9], %s3706_s13, %s3706_s13, %s3707_s14  }
  0x38   : > { %p4708_p7 = scmp.ne.s32.totalorder %s4705_s23, 0 }
  0x39   : > { %p4709_p3 = scmp.ne.s32.totalorder (!%p4708_p7), %s4706_s24, 0 }
  0x3a   : > { %222 = sbr.rel (%p4708_p7) target bundleno = 2626 (0xa42), region = 40 }
  0x41   : > { %3685 = dma.done.wait (%p4709_p3), [#allocation7], 16384  }
  0x42   : > { %3687 = vsyncadd (%p4709_p3), [#allocation7], 4294950912 }
  0x43   : > { %3689 = dma.done.wait (%p4709_p3), [#allocation9], 16384  }
  0x44   : > { %3691 = vsyncadd (%p4709_p3), [#allocation9], 4294950912  ;;  %s2822_s27 = sshll.u32 %s3694_s18, 3  ;;  %v3708_v0 = vmov 0.0   ;;  %p2823_p6 = scmp.ne.s32.totalorder %s3694_s18, 0 }
  0x45   : > { %s3837_s10 = scalar_lea.vmem [#allocation4], %s2822_s27  ;;  %s3841_s23 = scalar_lea.vmem [#allocation5], %s2822_s27  ;;  %v306_v1 = vlaneseq (!%p2823_p6)  ;;  %v270_v3 = vld [vmem:[%s4696_s0] sm:$0xff] (!%p2823_p6)  ;;  %v271_v5 = vld [vmem:[%s4696_s0 + $0x8] sm:$0xff] (!%p2823_p6)  ;;  %v272_v6 = vld [vmem:[%s4696_s0 + $0x10] sm:$0xff] (!%p2823_p6) }
  0x46   : > { %263 = vst [vmem:[%s3837_s10] sm:$0xff] %v3708_v0  ;;  %265 = vst [vmem:[%s3841_s23] sm:$0xff] %v3708_v0  ;;  %269 = sbr.rel (%p2823_p6) target bundleno = 95 (0x5f), region = 56  ;;  %s2824_s29 = sshll.u32 (!%p2823_p6), %s3694_s18, 2  ;;  %v273_v7 = vld [vmem:[%s4696_s0 + $0x18] sm:$0xff] (!%p2823_p6)  ;;  %v274_v12 = vld [vmem:[%s4696_s0 + $0x20] sm:$0xff] (!%p2823_p6) }
  0x47   : > { %s303_s12 = scalar_lea.vmem (!%p2823_p6), %s4699_s3, %s2824_s29  ;;  %v307_v2 = vshrl.u32 (!%p2823_p6), %v306_v1, 7  ;;  %v275_v13 = vld [vmem:[%s4696_s0 + $0x28] sm:$0xff] (!%p2823_p6)  ;;  %v276_v14 = vld [vmem:[%s4696_s0 + $0x30] sm:$0xff] (!%p2823_p6)  ;;  %v277_v15 = vld [vmem:[%s4696_s0 + $0x38] sm:$0xff] (!%p2823_p6) }
  0x48   : > { %v304_v4 = vld [vmem:[%s303_s12] sm:$0xf] (!%p2823_p6)  ;;  %v279_v17 = vld [vmem:[%s4696_s0 + $0x48] sm:$0xff] (!%p2823_p6)  ;;  %v280_v18 = vld [vmem:[%s4696_s0 + $0x50] sm:$0xff] (!%p2823_p6) }
  0x49   : > { %v308_v8 = vsub.s32 (!%p2823_p6), 0, %v307_v2  ;;  %v312_v9 = vsub.s32 (!%p2823_p6), 1, %v307_v2  ;;  %v316_v10 = vsub.s32 (!%p2823_p6), 2, %v307_v2  ;;  %v320_v11 = vsub.s32 (!%p2823_p6), 3, %v307_v2  ;;  %v278_v16 = vld [vmem:[%s4696_s0 + $0x40] sm:$0xff] (!%p2823_p6)  ;;  %v281_v23 = vld [vmem:[%s4696_s0 + $0x58] sm:$0xff] (!%p2823_p6) }
  0x4a   : > { %v282_v24 = vld [vmem:[%s4696_s0 + $0x60] sm:$0xff] (!%p2823_p6)  ;;  %v283_v25 = vld [vmem:[%s4696_s0 + $0x68] sm:$0xff] (!%p2823_p6)  ;;  %v284_v26 = vld [vmem:[%s4696_s0 + $0x70] sm:$0xff] (!%p2823_p6) }
  0x4b   : > { %v3883_v19 = vrot.slane (!%p2823_p6), %v304_v4, %v308_v8  ;;  %v3885_v20 = vrot.slane (!%p2823_p6), %v304_v4, %v312_v9  ;;  %v3887_v21 = vrot.slane (!%p2823_p6), %v304_v4, %v316_v10  ;;  %v3889_v22 = vrot.slane (!%p2823_p6), %v304_v4, %v320_v11  ;;  %v285_v27 = vld [vmem:[%s4696_s0 + $0x78] sm:$0xff] (!%p2823_p6)  ;;  %v286_v28 = vld [vmem:[%s4696_s0 + $0x80] sm:$0xff] (!%p2823_p6)  ;;  %v287_v33 = vld [vmem:[%s4696_s0 + $0x88] sm:$0xff] (!%p2823_p6) }
  0x4c   : > { %v288_v34 = vld [vmem:[%s4696_s0 + $0x90] sm:$0xff] (!%p2823_p6)  ;;  %v289_v35 = vld [vmem:[%s4696_s0 + $0x98] sm:$0xff] (!%p2823_p6)  ;;  %v290_v40 = vld [vmem:[%s4696_s0 + $0xa0] sm:$0xff] (!%p2823_p6) }
  0x4d   : > { %v326_v29 = vadd.f32 %v3883_v19, %v270_v3  ;;  %v327_v30 = vadd.f32 %v3885_v20, %v271_v5  ;;  %v328_v31 = vadd.f32 %v3887_v21, %v272_v6  ;;  %v329_v32 = vadd.f32 %v3889_v22, %v273_v7  ;;  %v291_v41 = vld [vmem:[%s4696_s0 + $0xa8] sm:$0xff]  ;;  %v292_v42 = vld [vmem:[%s4696_s0 + $0xb0] sm:$0xff]  ;;  %v293_v47 = vld [vmem:[%s4696_s0 + $0xb8] sm:$0xff] }
  0x4e   : > { %v330_v36 = vadd.f32 %v3883_v19, %v274_v12  ;;  %v331_v37 = vadd.f32 %v3885_v20, %v275_v13  ;;  %v332_v38 = vadd.f32 %v3887_v21, %v276_v14  ;;  %v333_v39 = vadd.f32 %v3889_v22, %v277_v15  ;;  %v294_v48 = vld [vmem:[%s4696_s0 + $0xc0] sm:$0xff]  ;;  %v295_v49 = vld [vmem:[%s4696_s0 + $0xc8] sm:$0xff]  ;;  %v296_v54 = vld [vmem:[%s4696_s0 + $0xd0] sm:$0xff] }
  0x4f   : > { %358 = vst [vmem:[#allocation2] sm:$0xff] %v326_v29  ;;  %359 = vst [vmem:[#allocation2 + $0x8] sm:$0xff] %v327_v30  ;;  %v334_v43 = vadd.f32 %v3883_v19, %v278_v16  ;;  %v335_v44 = vadd.f32 %v3885_v20, %v279_v17  ;;  %v336_v45 = vadd.f32 %v3887_v21, %v280_v18  ;;  %v297_v55 = vld [vmem:[%s4696_s0 + $0xd8] sm:$0xff]  ;;  %v298_v56 = vld [vmem:[%s4696_s0 + $0xe0] sm:$0xff] }
  0x50   : > { %360 = vst [vmem:[#allocation2 + $0x10] sm:$0xff] %v328_v31  ;;  %361 = vst [vmem:[#allocation2 + $0x18] sm:$0xff] %v329_v32  ;;  %v337_v46 = vadd.f32 %v3889_v22, %v281_v23  ;;  %v338_v50 = vadd.f32 %v3883_v19, %v282_v24  ;;  %v339_v51 = vadd.f32 %v3885_v20, %v283_v25  ;;  %v299_v61 = vld [vmem:[%s4696_s0 + $0xe8] sm:$0xff]  ;;  %v300_v62 = vld [vmem:[%s4696_s0 + $0xf0] sm:$0xff] }
  0x51   : > { %362 = vst [vmem:[#allocation2 + $0x20] sm:$0xff] %v330_v36  ;;  %363 = vst [vmem:[#allocation2 + $0x28] sm:$0xff] %v331_v37  ;;  %v340_v52 = vadd.f32 %v3887_v21, %v284_v26  ;;  %v341_v53 = vadd.f32 %v3889_v22, %v285_v27  ;;  %v342_v57 = vadd.f32 %v3883_v19, %v286_v28  ;;  %v301_v63 = vld [vmem:[%s4696_s0 + $0xf8] sm:$0xff] }
  0x52   : > { %364 = vst [vmem:[#allocation2 + $0x30] sm:$0xff] %v332_v38  ;;  %365 = vst [vmem:[#allocation2 + $0x38] sm:$0xff] %v333_v39  ;;  %v343_v58 = vadd.f32 %v3885_v20, %v287_v33  ;;  %v344_v59 = vadd.f32 %v3887_v21, %v288_v34  ;;  %v345_v60 = vadd.f32 %v3889_v22, %v289_v35 }
  0x53   : > { %366 = vst [vmem:[#allocation2 + $0x40] sm:$0xff] %v334_v43  ;;  %367 = vst [vmem:[#allocation2 + $0x48] sm:$0xff] %v335_v44  ;;  %v346_v1 = vadd.f32 %v3883_v19, %v290_v40  ;;  %v347_v2 = vadd.f32 %v3885_v20, %v291_v41  ;;  %v348_v3 = vadd.f32 %v3887_v21, %v292_v42 }
  0x54   : > { %368 = vst [vmem:[#allocation2 + $0x50] sm:$0xff] %v336_v45  ;;  %369 = vst [vmem:[#allocation2 + $0x58] sm:$0xff] %v337_v46  ;;  %v349_v4 = vadd.f32 %v3889_v22, %v293_v47  ;;  %v350_v5 = vadd.f32 %v3883_v19, %v294_v48  ;;  %v351_v6 = vadd.f32 %v3885_v20, %v295_v49 }
  0x55   : > { %370 = vst [vmem:[#allocation2 + $0x60] sm:$0xff] %v338_v50  ;;  %371 = vst [vmem:[#allocation2 + $0x68] sm:$0xff] %v339_v51  ;;  %v352_v7 = vadd.f32 %v3887_v21, %v296_v54  ;;  %v353_v8 = vadd.f32 %v3889_v22, %v297_v55  ;;  %v354_v9 = vadd.f32 %v3883_v19, %v298_v56 }
  0x56   : > { %372 = vst [vmem:[#allocation2 + $0x70] sm:$0xff] %v340_v52  ;;  %373 = vst [vmem:[#allocation2 + $0x78] sm:$0xff] %v341_v53  ;;  %v355_v10 = vadd.f32 %v3885_v20, %v299_v61  ;;  %v356_v11 = vadd.f32 %v3887_v21, %v300_v62  ;;  %v357_v12 = vadd.f32 %v3889_v22, %v301_v63 }
  0x57   : > { %374 = vst [vmem:[#allocation2 + $0x80] sm:$0xff] %v342_v57  ;;  %375 = vst [vmem:[#allocation2 + $0x88] sm:$0xff] %v343_v58 }
  0x58   : > { %376 = vst [vmem:[#allocation2 + $0x90] sm:$0xff] %v344_v59  ;;  %377 = vst [vmem:[#allocation2 + $0x98] sm:$0xff] %v345_v60 }
  0x59   : > { %378 = vst [vmem:[#allocation2 + $0xa0] sm:$0xff] %v346_v1  ;;  %379 = vst [vmem:[#allocation2 + $0xa8] sm:$0xff] %v347_v2 }
  0x5a   : > { %380 = vst [vmem:[#allocation2 + $0xb0] sm:$0xff] %v348_v3  ;;  %381 = vst [vmem:[#allocation2 + $0xb8] sm:$0xff] %v349_v4 }
  0x5b   : > { %382 = vst [vmem:[#allocation2 + $0xc0] sm:$0xff] %v350_v5  ;;  %383 = vst [vmem:[#allocation2 + $0xc8] sm:$0xff] %v351_v6 }
  0x5c   : > { %384 = vst [vmem:[#allocation2 + $0xd0] sm:$0xff] %v352_v7  ;;  %385 = vst [vmem:[#allocation2 + $0xd8] sm:$0xff] %v353_v8 }
  0x5d   : > { %386 = vst [vmem:[#allocation2 + $0xe0] sm:$0xff] %v354_v9  ;;  %387 = vst [vmem:[#allocation2 + $0xe8] sm:$0xff] %v355_v10 }
  0x5e   : > { %388 = vst [vmem:[#allocation2 + $0xf0] sm:$0xff] %v356_v11  ;;  %389 = vst [vmem:[#allocation2 + $0xf8] sm:$0xff] %v357_v12 }
  0x5f PF: > { %p2825_p8 = scmp.le.s32.totalorder %s3694_s18, 0 }
  0x60   : > { %s2860_s28 = sshll.u32 (!%p2825_p8), %s3694_s18, 9  ;;  %v3709_v13 = vmov (!%p2825_p8), 0.0   ;;  %s2828_s6 = sshll.u32 (!%p2825_p8), %s3694_s18, 2 }
  0x61   : > { %393 = sbr.rel (%p2825_p8) target bundleno = 379 (0x17b), region = 60  ;;  %533 = vmatprep.mubr.f32.mxu0 (!%p2825_p8), %v3709_v13  ;;  %646 = vmatprep.mubr.f32.mxu1 (!%p2825_p8), %v3709_v13  ;;  %s3990_s30 = scalar_lea.vmem (!%p2825_p8), [#allocation6], %s2860_s28 }
  0x62   : > { %v406_v14 = vld [vmem:[%s3990_s30 + $0x8] sm:$0xff] (!%p2825_p8)  ;;  %v408_v16 = vld [vmem:[%s3990_s30 + $0x18] sm:$0xff] (!%p2825_p8)  ;;  %v405_v19 = vld [vmem:[%s3990_s30] sm:$0xff] (!%p2825_p8)  ;;  %s696_s8 = scalar_lea.vmem (!%p2825_p8), %s4699_s3, %s2828_s6 }
  0x63   : > { %v410_v15 = vld [vmem:[%s3990_s30 + $0x28] sm:$0xff] (!%p2825_p8)  ;;  %v412_v18 = vld [vmem:[%s3990_s30 + $0x38] sm:$0xff] (!%p2825_p8)  ;;  %v409_v20 = vld [vmem:[%s3990_s30 + $0x20] sm:$0xff] (!%p2825_p8) }
  0x64   : > { %v2863_v17 = vpack.c.bf16 (!%p2825_p8), %v410_v15, %v406_v14  ;;  %v2895_v21 = vpack.c.bf16 (!%p2825_p8), %v412_v18, %v408_v16  ;;  %v2865_v22 = vpack.c.bf16 (!%p2825_p8), %v409_v20, %v405_v19  ;;  %v407_v23 = vld [vmem:[%s3990_s30 + $0x10] sm:$0xff] (!%p2825_p8)  ;;  %v414_v25 = vld [vmem:[%s3990_s30 + $0x48] sm:$0xff] (!%p2825_p8)  ;;  %v416_v28 = vld [vmem:[%s3990_s30 + $0x58] sm:$0xff] (!%p2825_p8) }
  0x65   : > { %v411_v24 = vld [vmem:[%s3990_s30 + $0x30] sm:$0xff] (!%p2825_p8)  ;;  %v418_v27 = vld [vmem:[%s3990_s30 + $0x68] sm:$0xff] (!%p2825_p8)  ;;  %v420_v29 = vld [vmem:[%s3990_s30 + $0x78] sm:$0xff] (!%p2825_p8) }
  0x66   : > { %2864 = vmatprep.subr.bf16.mxu0 (!%p2825_p8), %v2863_v17  ;;  %v2897_v26 = vpack.c.bf16 (!%p2825_p8), %v411_v24, %v407_v23  ;;  %2896 = vmatprep.subr.bf16.mxu1 (!%p2825_p8), %v2895_v21  ;;  %v2867_v30 = vpack.c.bf16 (!%p2825_p8), %v418_v27, %v414_v25  ;;  %v2899_v31 = vpack.c.bf16 (!%p2825_p8), %v420_v29, %v416_v28  ;;  %v413_v32 = vld [vmem:[%s3990_s30 + $0x40] sm:$0xff] (!%p2825_p8)  ;;  %v415_v34 = vld [vmem:[%s3990_s30 + $0x50] sm:$0xff] (!%p2825_p8)  ;;  %v422_v37 = vld [vmem:[%s3990_s30 + $0x88] sm:$0xff] (!%p2825_p8) }
  0x67   : > { %2866 = vmatpush1.bf16.msra.mxu0 (!%p2825_p8), %v2865_v22  ;;  %v417_v33 = vld [vmem:[%s3990_s30 + $0x60] sm:$0xff] (!%p2825_p8)  ;;  %v419_v36 = vld [vmem:[%s3990_s30 + $0x70] sm:$0xff] (!%p2825_p8)  ;;  %v426_v38 = vld [vmem:[%s3990_s30 + $0xa8] sm:$0xff] (!%p2825_p8) }
  0x68   : > { %2898 = vmatpush1.bf16.msra.mxu1 %v2897_v26  ;;  %v2869_v35 = vpack.c.bf16 %v417_v33, %v413_v32  ;;  %2868 = vmatprep.subr.bf16.mxu0 %v2867_v30  ;;  %v2901_v39 = vpack.c.bf16 %v419_v36, %v415_v34  ;;  %v2871_v40 = vpack.c.bf16 %v426_v38, %v422_v37  ;;  %v424_v41 = vld [vmem:[%s3990_s30 + $0x98] sm:$0xff]  ;;  %v421_v43 = vld [vmem:[%s3990_s30 + $0x80] sm:$0xff]  ;;  %v423_v46 = vld [vmem:[%s3990_s30 + $0x90] sm:$0xff] }
  0x69   : > { %2900 = vmatprep.subr.bf16.mxu1 %v2899_v31  ;;  %v428_v42 = vld [vmem:[%s3990_s30 + $0xb8] sm:$0xff]  ;;  %v425_v45 = vld [vmem:[%s3990_s30 + $0xa0] sm:$0xff]  ;;  %v427_v47 = vld [vmem:[%s3990_s30 + $0xb0] sm:$0xff] }
  0x6a   : > { %v2903_v44 = vpack.c.bf16 %v428_v42, %v424_v41  ;;  %v2873_v48 = vpack.c.bf16 %v425_v45, %v421_v43  ;;  %v430_v49 = vld [vmem:[%s3990_s30 + $0xc8] sm:$0xff]  ;;  %v432_v51 = vld [vmem:[%s3990_s30 + $0xd8] sm:$0xff]  ;;  %v2905_v52 = vpack.c.bf16 %v427_v47, %v423_v46  ;;  %v429_v55 = vld [vmem:[%s3990_s30 + $0xc0] sm:$0xff] }
  0x6b   : > { %2870 = vmatpush1.bf16.msra.mxu0 %v2869_v35  ;;  %v434_v50 = vld [vmem:[%s3990_s30 + $0xe8] sm:$0xff]  ;;  %v436_v54 = vld [vmem:[%s3990_s30 + $0xf8] sm:$0xff]  ;;  %v433_v56 = vld [vmem:[%s3990_s30 + $0xe0] sm:$0xff] }
  0x6c   : > { %2902 = vmatpush1.bf16.msra.mxu1 %v2901_v39  ;;  %2872 = vmatprep.subr.bf16.mxu0 %v2871_v40  ;;  %v2875_v53 = vpack.c.bf16 %v434_v50, %v430_v49  ;;  %v2907_v57 = vpack.c.bf16 %v436_v54, %v432_v51  ;;  %v431_v58 = vld [vmem:[%s3990_s30 + $0xd0] sm:$0xff]  ;;  %v438_v60 = vld [vmem:[%s3990_s30 + $0x108] sm:$0xff]  ;;  %v440_v62 = vld [vmem:[%s3990_s30 + $0x118] sm:$0xff]  ;;  %v2877_v1 = vpack.c.bf16 %v433_v56, %v429_v55  ;;  %v699_v56 = vlaneseq }
  0x6d   : > { %2904 = vmatprep.subr.bf16.mxu1 %v2903_v44  ;;  %v435_v59 = vld [vmem:[%s3990_s30 + $0xf0] sm:$0xff]  ;;  %v442_v61 = vld [vmem:[%s3990_s30 + $0x128] sm:$0xff]  ;;  %v444_v63 = vld [vmem:[%s3990_s30 + $0x138] sm:$0xff] }
  0x6e   : > { %v2909_v2 = vpack.c.bf16 %v435_v59, %v431_v58  ;;  %v2879_v3 = vpack.c.bf16 %v442_v61, %v438_v60  ;;  %v437_v4 = vld [vmem:[%s3990_s30 + $0x100] sm:$0xff]  ;;  %v439_v6 = vld [vmem:[%s3990_s30 + $0x110] sm:$0xff]  ;;  %v2911_v7 = vpack.c.bf16 %v444_v63, %v440_v62  ;;  %v446_v9 = vld [vmem:[%s3990_s30 + $0x148] sm:$0xff] }
  0x6f   : > { %2874 = vmatpush1.bf16.msra.mxu0 %v2873_v48  ;;  %v441_v5 = vld [vmem:[%s3990_s30 + $0x120] sm:$0xff]  ;;  %v443_v8 = vld [vmem:[%s3990_s30 + $0x130] sm:$0xff]  ;;  %v450_v10 = vld [vmem:[%s3990_s30 + $0x168] sm:$0xff] }
  0x70   : > { %2906 = vmatpush1.bf16.msra.mxu1 %v2905_v52  ;;  %2876 = vmatprep.subr.bf16.mxu0 %v2875_v53  ;;  %v448_v11 = vld [vmem:[%s3990_s30 + $0x158] sm:$0xff]  ;;  %v2881_v14 = vpack.c.bf16 %v441_v5, %v437_v4  ;;  %v2913_v15 = vpack.c.bf16 %v443_v8, %v439_v6  ;;  %v2883_v16 = vpack.c.bf16 %v450_v10, %v446_v9  ;;  %v445_v17 = vld [vmem:[%s3990_s30 + $0x140] sm:$0xff]  ;;  %v447_v19 = vld [vmem:[%s3990_s30 + $0x150] sm:$0xff] }
  0x71   : > { %2908 = vmatprep.subr.bf16.mxu1 %v2907_v57  ;;  %v452_v12 = vld [vmem:[%s3990_s30 + $0x178] sm:$0xff]  ;;  %v449_v18 = vld [vmem:[%s3990_s30 + $0x160] sm:$0xff]  ;;  %v451_v21 = vld [vmem:[%s3990_s30 + $0x170] sm:$0xff]  ;;  %v700_v57 = vshrl.u32 %v699_v56, 7 }
  0x72   : > { %v2915_v20 = vpack.c.bf16 %v452_v12, %v448_v11  ;;  %v454_v22 = vld [vmem:[%s3990_s30 + $0x188] sm:$0xff]  ;;  %v456_v24 = vld [vmem:[%s3990_s30 + $0x198] sm:$0xff]  ;;  %v2885_v26 = vpack.c.bf16 %v449_v18, %v445_v17  ;;  %v2917_v27 = vpack.c.bf16 %v451_v21, %v447_v19  ;;  %v453_v29 = vld [vmem:[%s3990_s30 + $0x180] sm:$0xff] }
  0x73   : > { %2878 = vmatpush1.bf16.msra.mxu0 %v2877_v1  ;;  %v458_v23 = vld [vmem:[%s3990_s30 + $0x1a8] sm:$0xff]  ;;  %v460_v25 = vld [vmem:[%s3990_s30 + $0x1b8] sm:$0xff]  ;;  %v457_v30 = vld [vmem:[%s3990_s30 + $0x1a0] sm:$0xff]  ;;  %v701_v58 = vsub.s32 0, %v700_v57  ;;  %v709_v60 = vsub.s32 2, %v700_v57  ;;  %v705_v61 = vsub.s32 1, %v700_v57 }
  0x74   : > { %2910 = vmatpush1.bf16.msra.mxu1 %v2909_v2  ;;  %2880 = vmatprep.subr.bf16.mxu0 %v2879_v3  ;;  %v2887_v28 = vpack.c.bf16 %v458_v23, %v454_v22  ;;  %v455_v31 = vld [vmem:[%s3990_s30 + $0x190] sm:$0xff]  ;;  %v2919_v32 = vpack.c.bf16 %v460_v25, %v456_v24  ;;  %v462_v34 = vld [vmem:[%s3990_s30 + $0x1c8] sm:$0xff]  ;;  %v464_v36 = vld [vmem:[%s3990_s30 + $0x1d8] sm:$0xff]  ;;  %v2889_v38 = vpack.c.bf16 %v457_v30, %v453_v29  ;;  %v713_v62 = vsub.s32 3, %v700_v57 }
  0x75   : > { %2912 = vmatprep.subr.bf16.mxu1 %v2911_v7  ;;  %v459_v33 = vld [vmem:[%s3990_s30 + $0x1b0] sm:$0xff]  ;;  %v466_v35 = vld [vmem:[%s3990_s30 + $0x1e8] sm:$0xff]  ;;  %v468_v37 = vld [vmem:[%s3990_s30 + $0x1f8] sm:$0xff] }
  0x76   : > { %v2921_v39 = vpack.c.bf16 %v459_v33, %v455_v31  ;;  %v2891_v40 = vpack.c.bf16 %v466_v35, %v462_v34  ;;  %v461_v41 = vld [vmem:[%s3990_s30 + $0x1c0] sm:$0xff]  ;;  %v2923_v43 = vpack.c.bf16 %v468_v37, %v464_v36  ;;  %v463_v44 = vld [vmem:[%s3990_s30 + $0x1d0] sm:$0xff]  ;;  %v395_v49 = vld [vmem:[#allocation3 + $0x8] sm:$0xff] }
  0x77   : > { %2882 = vmatpush1.bf16.msra.mxu0 %v2881_v14  ;;  %v465_v42 = vld [vmem:[%s3990_s30 + $0x1e0] sm:$0xff]  ;;  %v467_v45 = vld [vmem:[%s3990_s30 + $0x1f0] sm:$0xff]  ;;  %v397_v51 = vld [vmem:[#allocation3 + $0x18] sm:$0xff] }
  0x78   : > { %2914 = vmatpush1.bf16.msra.mxu1 %v2913_v15  ;;  %2884 = vmatprep.subr.bf16.mxu0 %v2883_v16  ;;  %v2893_v46 = vpack.c.bf16 %v465_v42, %v461_v41  ;;  %v2925_v47 = vpack.c.bf16 %v467_v45, %v463_v44  ;;  %v394_v48 = vld [vmem:[#allocation3] sm:$0xff]  ;;  %v396_v50 = vld [vmem:[#allocation3 + $0x10] sm:$0xff]  ;;  %v399_v53 = vld [vmem:[#allocation3 + $0x28] sm:$0xff] }
  0x79   : > { %2916 = vmatprep.subr.bf16.mxu1 %v2915_v20  ;;  %v398_v52 = vld [vmem:[#allocation3 + $0x20] sm:$0xff]  ;;  %v400_v54 = vld [vmem:[#allocation3 + $0x30] sm:$0xff]  ;;  %v401_v55 = vld [vmem:[#allocation3 + $0x38] sm:$0xff] }
  0x7a   : > { %v697_v59 = vld [vmem:[%s696_s8] sm:$0xf] }
  0x7b   : > { %2886 = vmatpush1.bf16.msra.mxu0 %v2885_v26  ;;  %v4074_v63 = vrot.slane %v697_v59, %v701_v58  ;;  %v4076_v1 = vrot.slane %v697_v59, %v709_v60  ;;  %v4078_v2 = vrot.slane %v697_v59, %v705_v61 }
  0x7c   : > { %2918 = vmatpush1.bf16.msra.mxu1 %v2917_v27  ;;  %2888 = vmatprep.subr.bf16.mxu0 %v2887_v28 }
  0x7d   : > { %2920 = vmatprep.subr.bf16.mxu1 %v2919_v32 }
  0x7f   : > { %2890 = vmatpush1.bf16.msra.mxu0 %v2889_v38 }
  0x80   : > { %2922 = vmatpush1.bf16.msra.mxu1 %v2921_v39  ;;  %2892 = vmatprep.subr.bf16.mxu0 %v2891_v40 }
  0x81   : > { %2924 = vmatprep.subr.bf16.mxu1 %v2923_v43 }
  0x83   : > { %2894 = vmatpush1.bf16.msra.mxu0 %v2893_v46 }
  0x84   : > { %2926 = vmatpush1.bf16.msra.mxu1 %v2925_v47 }
  0x86   : > { %534 = vmatmul.mubr.f32.vlgmr.msra.gmra.mrb[0].mxu0 %v394_v48 }
  0x87   : > { %647 = vmatmul.mubr.f32.vlgmr.msra.gmra.mrb[0].mxu1 %v394_v48  ;;  %539 = vmatprep.mubr.f32.mxu0 %v3709_v13 }
  0x88   : > { %652 = vmatprep.mubr.f32.mxu1 %v3709_v13 }
  0x8a   : > { %540 = vmatmul.mubr.f32.gmra.mrb[2].mxu0 %v395_v49 }
  0x8b   : > { %653 = vmatmul.mubr.f32.gmra.mrb[2].mxu1 %v395_v49  ;;  %545 = vmatprep.mubr.f32.mxu0 %v3709_v13 }
  0x8c   : > { %658 = vmatprep.mubr.f32.mxu1 %v3709_v13 }
  0x8e   : > { %546 = vmatmul.mubr.f32.gmra.mrb[4].mxu0 %v396_v50 }
  0x8f   : > { %659 = vmatmul.mubr.f32.gmra.mrb[4].mxu1 %v396_v50  ;;  %551 = vmatprep.mubr.f32.mxu0 %v3709_v13 }
  0x90   : > { %664 = vmatprep.mubr.f32.mxu1 %v3709_v13 }
  0x92   : > { %552 = vmatmul.mubr.f32.gmra.mrb[6].mxu0 %v397_v51 }
  0x93   : > { %665 = vmatmul.mubr.f32.gmra.mrb[6].mxu1 %v397_v51  ;;  %557 = vmatprep.mubr.f32.mxu0 %v3709_v13 }
  0x94   : > { %670 = vmatprep.mubr.f32.mxu1 %v3709_v13 }
  0x96   : > { %558 = vmatmul.mubr.f32.gmra.mrb[8].mxu0 %v398_v52 }
  0x97   : > { %671 = vmatmul.mubr.f32.gmra.mrb[8].mxu1 %v398_v52  ;;  %563 = vmatprep.mubr.f32.mxu0 %v3709_v13 }
  0x98   : > { %676 = vmatprep.mubr.f32.mxu1 %v3709_v13 }
  0x9a   : > { %564 = vmatmul.mubr.f32.gmra.mrb[10].mxu0 %v399_v53 }
  0x9b   : > { %677 = vmatmul.mubr.f32.gmra.mrb[10].mxu1 %v399_v53  ;;  %569 = vmatprep.mubr.f32.mxu0 %v3709_v13 }
  0x9c   : > { %682 = vmatprep.mubr.f32.mxu1 %v3709_v13 }
  0x9e   : > { %570 = vmatmul.mubr.f32.gmra.mrb[12].mxu0 %v400_v54 }
  0x9f   : > { %683 = vmatmul.mubr.f32.gmra.mrb[12].mxu1 %v400_v54  ;;  %575 = vmatprep.mubr.f32.mxu0 %v3709_v13 }
  0xa0   : > { %688 = vmatprep.mubr.f32.mxu1 %v3709_v13  ;;  %v4080_v13 = vrot.slane %v697_v59, %v713_v62 }
  0xa2   : > { %576 = vmatmul.mubr.f32.gmra.mrb[14].mxu0 %v401_v55 }
  0xa3   : > { %689 = vmatmul.mubr.f32.gmra.mrb[14].mxu1 %v401_v55 }
 0x159   : > { %v535_v3 = vpop.f32.mrb[0].mxu0 }
 0x15a   : > { %v719_v4 = vadd.f32 %v4074_v63, %v535_v3  ;;  %v648_v5 = vpop.f32.mrb[0].mxu1  ;;  %v537_v6 = vpop.f32.mrb[1].mxu0 }
 0x15b   : > { %v721_v7 = vadd.f32 %v4076_v1, %v648_v5  ;;  %v720_v8 = vadd.f32 %v4078_v2, %v537_v6  ;;  %v650_v9 = vpop.f32.mrb[1].mxu1 }
 0x15c   : > { %751 = vst [vmem:[#allocation2] sm:$0xff] %v719_v4  ;;  %v722_v10 = vadd.f32 %v4080_v13, %v650_v9 }
 0x15d   : > { %753 = vst [vmem:[#allocation2 + $0x10] sm:$0xff] %v721_v7  ;;  %752 = vst [vmem:[#allocation2 + $0x8] sm:$0xff] %v720_v8  ;;  %v541_v11 = vpop.f32.mrb[2].mxu0 }
 0x15e   : > { %754 = vst [vmem:[#allocation2 + $0x18] sm:$0xff] %v722_v10  ;;  %v723_v12 = vadd.f32 %v4074_v63, %v541_v11  ;;  %v654_v14 = vpop.f32.mrb[2].mxu1  ;;  %v543_v15 = vpop.f32.mrb[3].mxu0 }
 0x15f   : > { %v725_v16 = vadd.f32 %v4076_v1, %v654_v14  ;;  %v724_v17 = vadd.f32 %v4078_v2, %v543_v15  ;;  %v656_v18 = vpop.f32.mrb[3].mxu1 }
 0x160   : > { %755 = vst [vmem:[#allocation2 + $0x20] sm:$0xff] %v723_v12  ;;  %v726_v19 = vadd.f32 %v4080_v13, %v656_v18 }
 0x161   : > { %757 = vst [vmem:[#allocation2 + $0x30] sm:$0xff] %v725_v16  ;;  %756 = vst [vmem:[#allocation2 + $0x28] sm:$0xff] %v724_v17  ;;  %v547_v20 = vpop.f32.mrb[4].mxu0 }
 0x162   : > { %758 = vst [vmem:[#allocation2 + $0x38] sm:$0xff] %v726_v19  ;;  %v727_v21 = vadd.f32 %v4074_v63, %v547_v20  ;;  %v660_v22 = vpop.f32.mrb[4].mxu1  ;;  %v549_v23 = vpop.f32.mrb[5].mxu0 }
 0x163   : > { %v729_v24 = vadd.f32 %v4076_v1, %v660_v22  ;;  %v728_v25 = vadd.f32 %v4078_v2, %v549_v23  ;;  %v662_v26 = vpop.f32.mrb[5].mxu1 }
 0x164   : > { %759 = vst [vmem:[#allocation2 + $0x40] sm:$0xff] %v727_v21  ;;  %v730_v27 = vadd.f32 %v4080_v13, %v662_v26 }
 0x165   : > { %761 = vst [vmem:[#allocation2 + $0x50] sm:$0xff] %v729_v24  ;;  %760 = vst [vmem:[#allocation2 + $0x48] sm:$0xff] %v728_v25  ;;  %v553_v28 = vpop.f32.mrb[6].mxu0 }
 0x166   : > { %762 = vst [vmem:[#allocation2 + $0x58] sm:$0xff] %v730_v27  ;;  %v731_v29 = vadd.f32 %v4074_v63, %v553_v28  ;;  %v666_v30 = vpop.f32.mrb[6].mxu1  ;;  %v555_v31 = vpop.f32.mrb[7].mxu0 }
 0x167   : > { %v733_v32 = vadd.f32 %v4076_v1, %v666_v30  ;;  %v732_v33 = vadd.f32 %v4078_v2, %v555_v31  ;;  %v668_v34 = vpop.f32.mrb[7].mxu1 }
 0x168   : > { %763 = vst [vmem:[#allocation2 + $0x60] sm:$0xff] %v731_v29  ;;  %v734_v35 = vadd.f32 %v4080_v13, %v668_v34 }
 0x169   : > { %765 = vst [vmem:[#allocation2 + $0x70] sm:$0xff] %v733_v32  ;;  %764 = vst [vmem:[#allocation2 + $0x68] sm:$0xff] %v732_v33  ;;  %v559_v36 = vpop.f32.mrb[8].mxu0 }
 0x16a   : > { %766 = vst [vmem:[#allocation2 + $0x78] sm:$0xff] %v734_v35  ;;  %v735_v37 = vadd.f32 %v4074_v63, %v559_v36  ;;  %v672_v38 = vpop.f32.mrb[8].mxu1  ;;  %v561_v39 = vpop.f32.mrb[9].mxu0 }
 0x16b   : > { %v737_v40 = vadd.f32 %v4076_v1, %v672_v38  ;;  %v736_v41 = vadd.f32 %v4078_v2, %v561_v39  ;;  %v674_v42 = vpop.f32.mrb[9].mxu1 }
 0x16c   : > { %767 = vst [vmem:[#allocation2 + $0x80] sm:$0xff] %v735_v37  ;;  %v738_v43 = vadd.f32 %v4080_v13, %v674_v42 }
 0x16d   : > { %769 = vst [vmem:[#allocation2 + $0x90] sm:$0xff] %v737_v40  ;;  %768 = vst [vmem:[#allocation2 + $0x88] sm:$0xff] %v736_v41  ;;  %v565_v44 = vpop.f32.mrb[10].mxu0 }
 0x16e   : > { %770 = vst [vmem:[#allocation2 + $0x98] sm:$0xff] %v738_v43  ;;  %v739_v45 = vadd.f32 %v4074_v63, %v565_v44  ;;  %v678_v46 = vpop.f32.mrb[10].mxu1  ;;  %v567_v47 = vpop.f32.mrb[11].mxu0 }
 0x16f   : > { %v741_v48 = vadd.f32 %v4076_v1, %v678_v46  ;;  %v740_v49 = vadd.f32 %v4078_v2, %v567_v47  ;;  %v680_v50 = vpop.f32.mrb[11].mxu1 }
 0x170   : > { %771 = vst [vmem:[#allocation2 + $0xa0] sm:$0xff] %v739_v45  ;;  %v742_v51 = vadd.f32 %v4080_v13, %v680_v50 }
 0x171   : > { %773 = vst [vmem:[#allocation2 + $0xb0] sm:$0xff] %v741_v48  ;;  %772 = vst [vmem:[#allocation2 + $0xa8] sm:$0xff] %v740_v49  ;;  %v571_v52 = vpop.f32.mrb[12].mxu0 }
 0x172   : > { %774 = vst [vmem:[#allocation2 + $0xb8] sm:$0xff] %v742_v51  ;;  %v743_v53 = vadd.f32 %v4074_v63, %v571_v52  ;;  %v684_v54 = vpop.f32.mrb[12].mxu1  ;;  %v573_v55 = vpop.f32.mrb[13].mxu0 }
 0x173   : > { %v745_v56 = vadd.f32 %v4076_v1, %v684_v54  ;;  %v744_v57 = vadd.f32 %v4078_v2, %v573_v55  ;;  %v686_v58 = vpop.f32.mrb[13].mxu1 }
 0x174   : > { %775 = vst [vmem:[#allocation2 + $0xc0] sm:$0xff] %v743_v53  ;;  %v746_v59 = vadd.f32 %v4080_v13, %v686_v58 }
 0x175   : > { %777 = vst [vmem:[#allocation2 + $0xd0] sm:$0xff] %v745_v56  ;;  %776 = vst [vmem:[#allocation2 + $0xc8] sm:$0xff] %v744_v57  ;;  %v577_v60 = vpop.f32.mrb[14].mxu0 }
 0x176   : > { %778 = vst [vmem:[#allocation2 + $0xd8] sm:$0xff] %v746_v59  ;;  %v747_v61 = vadd.f32 %v4074_v63, %v577_v60  ;;  %v690_v62 = vpop.f32.mrb[14].mxu1  ;;  %v579_v3 = vpop.f32.mrb[15].mxu0 }
 0x177   : > { %v749_v4 = vadd.f32 %v4076_v1, %v690_v62  ;;  %v748_v5 = vadd.f32 %v4078_v2, %v579_v3  ;;  %v692_v6 = vpop.f32.mrb[15].mxu1 }
 0x178   : > { %779 = vst [vmem:[#allocation2 + $0xe0] sm:$0xff] %v747_v61  ;;  %v750_v7 = vadd.f32 %v4080_v13, %v692_v6 }
 0x179   : > { %781 = vst [vmem:[#allocation2 + $0xf0] sm:$0xff] %v749_v4  ;;  %780 = vst [vmem:[#allocation2 + $0xe8] sm:$0xff] %v748_v5 }
 0x17a   : > { %782 = vst [vmem:[#allocation2 + $0xf8] sm:$0xff] %v750_v7 }
 0x17b PF: > { %s2861_s9 = sshll.u32 %s3694_s18, 9  ;;  %923 = vmatprep.mubr.f32.mxu0 %v3708_v0  ;;  %994 = vmatprep.mubr.f32.mxu1 %v3708_v0  ;;  %p2719_p4 = scmp.eq.s32.totalorder %s3694_s18, 1 }
 0x17c   : > { %s4117_s27 = scalar_lea.vmem [#allocation8], %s2861_s9  ;;  %vm2734_vm0 = vcmask (%p2719_p4), 7168  }
 0x17d   : > { %v796_v63 = vld [vmem:[%s4117_s27 + $0x8] sm:$0xff]  ;;  %v795_v2 = vld [vmem:[%s4117_s27] sm:$0xff]  ;;  %v798_v23 = vld [vmem:[%s4117_s27 + $0x18] sm:$0xff] }
 0x17e   : > { %v800_v1 = vld [vmem:[%s4117_s27 + $0x28] sm:$0xff]  ;;  %v799_v8 = vld [vmem:[%s4117_s27 + $0x20] sm:$0xff]  ;;  %v802_v24 = vld [vmem:[%s4117_s27 + $0x38] sm:$0xff] }
 0x17f   : > { %v4122_v13 = vpack.c.bf16 %v800_v1, %v796_v63  ;;  %v804_v9 = vld [vmem:[%s4117_s27 + $0x48] sm:$0xff]  ;;  %v4127_v11 = vpack.c.bf16 %v799_v8, %v795_v2  ;;  %v803_v14 = vld [vmem:[%s4117_s27 + $0x40] sm:$0xff]  ;;  %v4148_v26 = vpack.c.bf16 %v802_v24, %v798_v23  ;;  %v797_v27 = vld [vmem:[%s4117_s27 + $0x10] sm:$0xff] }
 0x180   : > { %v808_v10 = vld [vmem:[%s4117_s27 + $0x68] sm:$0xff]  ;;  %v807_v15 = vld [vmem:[%s4117_s27 + $0x60] sm:$0xff]  ;;  %v801_v28 = vld [vmem:[%s4117_s27 + $0x30] sm:$0xff] }
 0x181   : > { %v4129_v12 = vpack.c.bf16 %v808_v10, %v804_v9  ;;  %v812_v16 = vld [vmem:[%s4117_s27 + $0x88] sm:$0xff]  ;;  %2928 = vmatprep.subr.bf16.mxu0 %v4122_v13  ;;  %v4137_v18 = vpack.c.bf16 %v807_v15, %v803_v14  ;;  %v811_v19 = vld [vmem:[%s4117_s27 + $0x80] sm:$0xff]  ;;  %v4152_v29 = vpack.c.bf16 %v801_v28, %v797_v27  ;;  %2960 = vmatprep.subr.bf16.mxu1 %v4148_v26  ;;  %v806_v31 = vld [vmem:[%s4117_s27 + $0x58] sm:$0xff] }
 0x182   : > { %v816_v17 = vld [vmem:[%s4117_s27 + $0xa8] sm:$0xff]  ;;  %2930 = vmatpush1.bf16.msra.mxu0 %v4127_v11  ;;  %v815_v20 = vld [vmem:[%s4117_s27 + $0xa0] sm:$0xff]  ;;  %v810_v32 = vld [vmem:[%s4117_s27 + $0x78] sm:$0xff] }
 0x183   : > { %2932 = vmatprep.subr.bf16.mxu0 %v4129_v12  ;;  %v4142_v21 = vpack.c.bf16 %v816_v17, %v812_v16  ;;  %v820_v22 = vld [vmem:[%s4117_s27 + $0xc8] sm:$0xff]  ;;  %v4155_v30 = vpack.c.bf16 %v815_v20, %v811_v19  ;;  %v805_v33 = vld [vmem:[%s4117_s27 + $0x50] sm:$0xff]  ;;  %v819_v35 = vld [vmem:[%s4117_s27 + $0xc0] sm:$0xff]  ;;  %2962 = vmatpush1.bf16.msra.mxu1 %v4152_v29  ;;  %v4167_v37 = vpack.c.bf16 %v810_v32, %v806_v31 }
 0x184   : > { %v824_v25 = vld [vmem:[%s4117_s27 + $0xe8] sm:$0xff]  ;;  %v823_v36 = vld [vmem:[%s4117_s27 + $0xe0] sm:$0xff]  ;;  %v809_v38 = vld [vmem:[%s4117_s27 + $0x70] sm:$0xff] }
 0x185   : > { %v4162_v34 = vpack.c.bf16 %v824_v25, %v820_v22  ;;  %v828_v39 = vld [vmem:[%s4117_s27 + $0x108] sm:$0xff]  ;;  %v4172_v41 = vpack.c.bf16 %v809_v38, %v805_v33  ;;  %v814_v42 = vld [vmem:[%s4117_s27 + $0x98] sm:$0xff]  ;;  %2964 = vmatprep.subr.bf16.mxu1 %v4167_v37  ;;  %v813_v44 = vld [vmem:[%s4117_s27 + $0x90] sm:$0xff]  ;;  %v4180_v46 = vpack.c.bf16 %v823_v36, %v819_v35 }
 0x186   : > { %2934 = vmatpush1.bf16.msra.mxu0 %v4137_v18  ;;  %v832_v40 = vld [vmem:[%s4117_s27 + $0x128] sm:$0xff]  ;;  %v818_v43 = vld [vmem:[%s4117_s27 + $0xb8] sm:$0xff]  ;;  %v817_v45 = vld [vmem:[%s4117_s27 + $0xb0] sm:$0xff] }
 0x187   : > { %2936 = vmatprep.subr.bf16.mxu0 %v4142_v21  ;;  %v827_v47 = vld [vmem:[%s4117_s27 + $0x100] sm:$0xff]  ;;  %v4184_v49 = vpack.c.bf16 %v818_v43, %v814_v42  ;;  %v4187_v50 = vpack.c.bf16 %v832_v40, %v828_v39  ;;  %2966 = vmatpush1.bf16.msra.mxu1 %v4172_v41  ;;  %v836_v51 = vld [vmem:[%s4117_s27 + $0x148] sm:$0xff]  ;;  %v4191_v52 = vpack.c.bf16 %v817_v45, %v813_v44  ;;  %v822_v53 = vld [vmem:[%s4117_s27 + $0xd8] sm:$0xff] }
 0x188   : > { %v831_v48 = vld [vmem:[%s4117_s27 + $0x120] sm:$0xff]  ;;  %v826_v54 = vld [vmem:[%s4117_s27 + $0xf8] sm:$0xff]  ;;  %v840_v55 = vld [vmem:[%s4117_s27 + $0x168] sm:$0xff] }
 0x189   : > { %2968 = vmatprep.subr.bf16.mxu1 %v4184_v49  ;;  %v4197_v56 = vpack.c.bf16 %v826_v54, %v822_v53  ;;  %v821_v57 = vld [vmem:[%s4117_s27 + $0xd0] sm:$0xff]  ;;  %v4202_v59 = vpack.c.bf16 %v831_v48, %v827_v47  ;;  %v830_v60 = vld [vmem:[%s4117_s27 + $0x118] sm:$0xff]  ;;  %v4207_v62 = vpack.c.bf16 %v840_v55, %v836_v51  ;;  %v835_v3 = vld [vmem:[%s4117_s27 + $0x140] sm:$0xff] }
 0x18a   : > { %2938 = vmatpush1.bf16.msra.mxu0 %v4155_v30  ;;  %v825_v58 = vld [vmem:[%s4117_s27 + $0xf0] sm:$0xff]  ;;  %v834_v61 = vld [vmem:[%s4117_s27 + $0x138] sm:$0xff]  ;;  %v839_v4 = vld [vmem:[%s4117_s27 + $0x160] sm:$0xff] }
 0x18b   : > { %2940 = vmatprep.subr.bf16.mxu0 %v4162_v34  ;;  %2970 = vmatpush1.bf16.msra.mxu1 %v4191_v52  ;;  %v844_v5 = vld [vmem:[%s4117_s27 + $0x188] sm:$0xff]  ;;  %v4213_v6 = vpack.c.bf16 %v825_v58, %v821_v57  ;;  %v4217_v63 = vpack.c.bf16 %v834_v61, %v830_v60  ;;  %v829_v1 = vld [vmem:[%s4117_s27 + $0x110] sm:$0xff]  ;;  %v838_v8 = vld [vmem:[%s4117_s27 + $0x158] sm:$0xff]  ;;  %v4224_v10 = vpack.c.bf16 %v839_v4, %v835_v3 }
 0x18c   : > { %v848_v7 = vld [vmem:[%s4117_s27 + $0x1a8] sm:$0xff]  ;;  %2972 = vmatprep.subr.bf16.mxu1 %v4197_v56  ;;  %v833_v2 = vld [vmem:[%s4117_s27 + $0x130] sm:$0xff]  ;;  %v842_v9 = vld [vmem:[%s4117_s27 + $0x178] sm:$0xff] }
 0x18d   : > { %v4227_v14 = vpack.c.bf16 %v848_v7, %v844_v5  ;;  %v843_v15 = vld [vmem:[%s4117_s27 + $0x180] sm:$0xff]  ;;  %v852_v17 = vld [vmem:[%s4117_s27 + $0x1c8] sm:$0xff]  ;;  %v4233_v19 = vpack.c.bf16 %v833_v2, %v829_v1  ;;  %v4237_v22 = vpack.c.bf16 %v842_v9, %v838_v8  ;;  %v837_v23 = vld [vmem:[%s4117_s27 + $0x150] sm:$0xff] }
 0x18e   : > { %2942 = vmatpush1.bf16.msra.mxu0 %v4180_v46  ;;  %v847_v16 = vld [vmem:[%s4117_s27 + $0x1a0] sm:$0xff]  ;;  %v856_v20 = vld [vmem:[%s4117_s27 + $0x1e8] sm:$0xff]  ;;  %v841_v24 = vld [vmem:[%s4117_s27 + $0x170] sm:$0xff] }
 0x18f   : > { %2944 = vmatprep.subr.bf16.mxu0 %v4187_v50  ;;  %2974 = vmatpush1.bf16.msra.mxu1 %v4213_v6  ;;  %v846_v25 = vld [vmem:[%s4117_s27 + $0x198] sm:$0xff]  ;;  %v4244_v28 = vpack.c.bf16 %v847_v16, %v843_v15  ;;  %v4247_v31 = vpack.c.bf16 %v856_v20, %v852_v17  ;;  %v851_v32 = vld [vmem:[%s4117_s27 + $0x1c0] sm:$0xff]  ;;  %v4252_v35 = vpack.c.bf16 %v841_v24, %v837_v23  ;;  %v845_v38 = vld [vmem:[%s4117_s27 + $0x190] sm:$0xff] }
 0x190   : > { %2976 = vmatprep.subr.bf16.mxu1 %v4217_v63  ;;  %v850_v27 = vld [vmem:[%s4117_s27 + $0x1b8] sm:$0xff]  ;;  %v855_v33 = vld [vmem:[%s4117_s27 + $0x1e0] sm:$0xff]  ;;  %v849_v39 = vld [vmem:[%s4117_s27 + $0x1b0] sm:$0xff] }
 0x191   : > { %v4255_v36 = vpack.c.bf16 %v850_v27, %v846_v25  ;;  %v854_v40 = vld [vmem:[%s4117_s27 + $0x1d8] sm:$0xff]  ;;  %v4262_v43 = vpack.c.bf16 %v855_v33, %v851_v32  ;;  %v4266_v44 = vpack.c.bf16 %v849_v39, %v845_v38  ;;  %v853_v47 = vld [vmem:[%s4117_s27 + $0x1d0] sm:$0xff]  ;;  %v785_v51 = vld [vmem:[%s3837_s10] sm:$0xff] }
 0x192   : > { %2946 = vmatpush1.bf16.msra.mxu0 %v4202_v59  ;;  %v858_v42 = vld [vmem:[%s4117_s27 + $0x1f8] sm:$0xff]  ;;  %v857_v48 = vld [vmem:[%s4117_s27 + $0x1f0] sm:$0xff]  ;;  %v788_v54 = vld [vmem:[#allocation2] sm:$0xff] }
 0x193   : > { %2948 = vmatprep.subr.bf16.mxu0 %v4207_v62  ;;  %2978 = vmatpush1.bf16.msra.mxu1 %v4233_v19  ;;  %v4269_v45 = vpack.c.bf16 %v858_v42, %v854_v40  ;;  %v4276_v53 = vpack.c.bf16 %v857_v48, %v853_v47  ;;  %v789_v55 = vld [vmem:[#allocation2 + $0x8] sm:$0xff]  ;;  %v791_v5 = vld [vmem:[#allocation2 + $0x18] sm:$0xff]  ;;  %v790_v8 = vld [vmem:[#allocation2 + $0x10] sm:$0xff] }
 0x194   : > { %2980 = vmatprep.subr.bf16.mxu1 %v4237_v22  ;;  %v787_v27 = vld [vmem:[%s3841_s23] sm:$0xff] }
 0x196   : > { %2950 = vmatpush1.bf16.msra.mxu0 %v4224_v10 }
 0x197   : > { %2952 = vmatprep.subr.bf16.mxu0 %v4227_v14  ;;  %2982 = vmatpush1.bf16.msra.mxu1 %v4252_v35 }
 0x198   : > { %2984 = vmatprep.subr.bf16.mxu1 %v4255_v36 }
 0x19a   : > { %2954 = vmatpush1.bf16.msra.mxu0 %v4244_v28 }
 0x19b   : > { %2956 = vmatprep.subr.bf16.mxu0 %v4247_v31  ;;  %2986 = vmatpush1.bf16.msra.mxu1 %v4266_v44 }
 0x19c   : > { %2988 = vmatprep.subr.bf16.mxu1 %v4269_v45 }
 0x19e   : > { %2958 = vmatpush1.bf16.msra.mxu0 %v4262_v43 }
 0x19f   : > { %2992 = vmatprep.subr.bf16.mxu0 %v4122_v13  ;;  %2990 = vmatpush1.bf16.msra.mxu1 %v4276_v53 }
 0x1a0   : > { %3024 = vmatprep.subr.bf16.mxu1 %v4148_v26 }
 0x1a1   : > { %924 = vmatmul.mubr.f32.vlgmr.msra.gmra.mrb[0].mxu0 %v785_v51 }
 0x1a2   : > { %2994 = vmatpush1.bf16.msra.mxu0 %v4127_v11  ;;  %1163 = vmatprep.mubr.f32.mxu0 %v3708_v0 }
 0x1a3   : > { %2996 = vmatprep.subr.bf16.mxu0 %v4129_v12  ;;  %995 = vmatmul.mubr.f32.vlgmr.msra.gmra.mrb[0].mxu1 %v785_v51 }
 0x1a4   : > { %3026 = vmatpush1.bf16.msra.mxu1 %v4152_v29  ;;  %1234 = vmatprep.mubr.f32.mxu1 %v3708_v0 }
 0x1a5   : > { %3028 = vmatprep.subr.bf16.mxu1 %v4167_v37 }
 0x1a6   : > { %2998 = vmatpush1.bf16.msra.mxu0 %v4137_v18 }
 0x1a7   : > { %3000 = vmatprep.subr.bf16.mxu0 %v4142_v21 }
 0x1a8   : > { %3030 = vmatpush1.bf16.msra.mxu1 %v4172_v41 }
 0x1a9   : > { %3032 = vmatprep.subr.bf16.mxu1 %v4184_v49 }
 0x1aa   : > { %3002 = vmatpush1.bf16.msra.mxu0 %v4155_v30 }
 0x1ab   : > { %3004 = vmatprep.subr.bf16.mxu0 %v4162_v34 }
 0x1ac   : > { %3034 = vmatpush1.bf16.msra.mxu1 %v4191_v52 }
 0x1ad   : > { %3036 = vmatprep.subr.bf16.mxu1 %v4197_v56 }
 0x1ae   : > { %3006 = vmatpush1.bf16.msra.mxu0 %v4180_v46 }
 0x1af   : > { %3008 = vmatprep.subr.bf16.mxu0 %v4187_v50 }
 0x1b0   : > { %3038 = vmatpush1.bf16.msra.mxu1 %v4213_v6 }
 0x1b1   : > { %3040 = vmatprep.subr.bf16.mxu1 %v4217_v63 }
 0x1b2   : > { %3010 = vmatpush1.bf16.msra.mxu0 %v4202_v59 }
 0x1b3   : > { %3012 = vmatprep.subr.bf16.mxu0 %v4207_v62 }
 0x1b4   : > { %3042 = vmatpush1.bf16.msra.mxu1 %v4233_v19 }
 0x1b5   : > { %3044 = vmatprep.subr.bf16.mxu1 %v4237_v22 }
 0x1b6   : > { %3014 = vmatpush1.bf16.msra.mxu0 %v4224_v10 }
 0x1b7   : > { %3016 = vmatprep.subr.bf16.mxu0 %v4227_v14 }
 0x1b8   : > { %3046 = vmatpush1.bf16.msra.mxu1 %v4252_v35 }
 0x1b9   : > { %3048 = vmatprep.subr.bf16.mxu1 %v4255_v36 }
 0x1ba   : > { %3018 = vmatpush1.bf16.msra.mxu0 %v4244_v28 }
 0x1bb   : > { %3020 = vmatprep.subr.bf16.mxu0 %v4247_v31 }
 0x1bc   : > { %3050 = vmatpush1.bf16.msra.mxu1 %v4266_v44 }
 0x1bd   : > { %3052 = vmatprep.subr.bf16.mxu1 %v4269_v45 }
 0x1be   : > { %3022 = vmatpush1.bf16.msra.mxu0 %v4262_v43 }
 0x1bf   : > { %3056 = vmatprep.subr.bf16.mxu0 %v4122_v13 }
 0x1c0   : > { %3054 = vmatpush1.bf16.msra.mxu1 %v4276_v53 }
 0x1c1   : > { %3088 = vmatprep.subr.bf16.mxu1 %v4148_v26 }
 0x274   : > { %v925_v57 = vpop.f32.mrb[0].mxu0 }
 0x275   : > { %v1001_v58 = vadd.f32 %v925_v57, %v788_v54  ;;  %v927_v60 = vpop.f32.mrb[1].mxu0 }
 0x276   : > { %v1002_v61 = vadd.f32 %v927_v60, %v789_v55  ;;  %v996_v7 = vpop.f32.mrb[0].mxu1 }
 0x277   : > { %v2832_v3 = vmul.f32 -1.442695, %v1001_v58  ;;  %v998_v1 = vpop.f32.mrb[1].mxu1  ;;  %v1003_v15 = vadd.f32 %v996_v7, %v790_v8 }
 0x278   : > { %v2833_v4 = vmul.f32 -1.442695, %v1002_v61  ;;  %v1004_v2 = vadd.f32 %v998_v1, %v791_v5 }
 0x279   : > { %3488 = vpow2.f32 %v2832_v3  ;;  %v1034_v3 = vld [vmem:[#allocation2 + $0x38] sm:$0xff] }
 0x27a   : > { %3490 = vpow2.f32 %v2833_v4  ;;  %v2834_v9 = vmul.f32 -1.442695, %v1004_v2  ;;  %v1033_v4 = vld [vmem:[#allocation2 + $0x30] sm:$0xff] }
 0x27c   : > { %3492 = vpow2.f32 %v2834_v9 }
 0x27d   : > { %3494 = vtanh.f32 %v1003_v15 }
 0x283   : > { %v3489_v16 = vpop.eup %3488 }
 0x284   : > { %v3491_v17 = vpop.eup %3490  ;;  %v1008_v20 = vadd.f32 1.0, %v3489_v16 }
 0x285   : > { %v1014_v23 = vadd.f32 1.0, %v3491_v17 }
 0x286   : > { %3496 = vrcp.f32 %v1008_v20  ;;  %v3493_v24 = vpop.eup %3492 }
 0x287   : > { %3498 = vrcp.f32 %v1014_v23  ;;  %v3495_v25 = vpop.eup %3494  ;;  %v1021_v33 = vadd.f32 1.0, %v3493_v24 }
 0x289   : > { %3500 = vrcp.f32 %v1021_v33 }
 0x290   : > { %v3497_v32 = vpop.eup %3496 }
 0x291   : > { %v3499_v38 = vpop.eup %3498  ;;  %v1025_v39 = vmul.f32 %v3497_v32, %v3495_v25 }
 0x292   : > { %v1024_v40 = vmul.f32 %v3499_v38, %v787_v27  ;;  %v1275_v38 = vld [vmem:[#allocation2 + $0x58] sm:$0xff] }
 0x293   : > { %v3501_v47 = vpop.eup %3500 }
 0x294   : > { %v4317_v42 = vadd.f32 %v1025_v39, %v1024_v40  ;;  %v1274_v40 = vld [vmem:[#allocation2 + $0x50] sm:$0xff] }
 0x296   : > { %3502 = vtanh.f32 %v4317_v42 }
 0x2a0   : > { %v3503_v48 = vpop.eup %3502 }
 0x2a1   : > { %v1028_v51 = vmul.f32 %v3503_v48, %v3501_v47 }
 0x2a3   : > { %1029 = vst [vmem:[#allocation3] sm:$0xff] %v1028_v51  ;;  %1164 = vmatmul.mubr.f32.vlgmr.msra.gmra.mrb[2].mxu0 %v1028_v51  ;;  %1235 = vmatmul.mubr.f32.vlgmr.msra.gmra.mrb[2].mxu1 %v1028_v51 }
 0x2a4   : > { %3058 = vmatpush1.bf16.msra.mxu0 %v4127_v11  ;;  %3090 = vmatpush1.bf16.msra.mxu1 %v4152_v29 }
 0x2a5   : > { %3060 = vmatprep.subr.bf16.mxu0 %v4129_v12  ;;  %3092 = vmatprep.subr.bf16.mxu1 %v4167_v37 }
 0x2a6   : > { %1404 = vmatprep.mubr.f32.mxu0 %v3708_v0  ;;  %1475 = vmatprep.mubr.f32.mxu1 %v3708_v0 }
 0x2a8   : > { %3062 = vmatpush1.bf16.msra.mxu0 %v4137_v18  ;;  %3094 = vmatpush1.bf16.msra.mxu1 %v4172_v41 }
 0x2a9   : > { %3064 = vmatprep.subr.bf16.mxu0 %v4142_v21  ;;  %3096 = vmatprep.subr.bf16.mxu1 %v4184_v49 }
 0x2ac   : > { %3066 = vmatpush1.bf16.msra.mxu0 %v4155_v30  ;;  %3098 = vmatpush1.bf16.msra.mxu1 %v4191_v52 }
 0x2ad   : > { %3068 = vmatprep.subr.bf16.mxu0 %v4162_v34  ;;  %3100 = vmatprep.subr.bf16.mxu1 %v4197_v56 }
 0x2b0   : > { %3070 = vmatpush1.bf16.msra.mxu0 %v4180_v46  ;;  %3102 = vmatpush1.bf16.msra.mxu1 %v4213_v6  ;;  %v1031_v46 = vld [vmem:[#allocation2 + $0x20] sm:$0xff] }
 0x2b1   : > { %3072 = vmatprep.subr.bf16.mxu0 %v4187_v50  ;;  %3104 = vmatprep.subr.bf16.mxu1 %v4217_v63 }
 0x2b4   : > { %3074 = vmatpush1.bf16.msra.mxu0 %v4202_v59  ;;  %3106 = vmatpush1.bf16.msra.mxu1 %v4233_v19  ;;  %v1032_v59 = vld [vmem:[#allocation2 + $0x28] sm:$0xff] }
 0x2b5   : > { %3076 = vmatprep.subr.bf16.mxu0 %v4207_v62  ;;  %3108 = vmatprep.subr.bf16.mxu1 %v4237_v22 }
 0x2b8   : > { %3078 = vmatpush1.bf16.msra.mxu0 %v4224_v10  ;;  %3110 = vmatpush1.bf16.msra.mxu1 %v4252_v35 }
 0x2b9   : > { %3080 = vmatprep.subr.bf16.mxu0 %v4227_v14  ;;  %3112 = vmatprep.subr.bf16.mxu1 %v4255_v36 }
 0x2bc   : > { %3082 = vmatpush1.bf16.msra.mxu0 %v4244_v28  ;;  %3114 = vmatpush1.bf16.msra.mxu1 %v4266_v44 }
 0x2bd   : > { %3084 = vmatprep.subr.bf16.mxu0 %v4247_v31  ;;  %3116 = vmatprep.subr.bf16.mxu1 %v4269_v45 }
 0x2c0   : > { %3086 = vmatpush1.bf16.msra.mxu0 %v4262_v43  ;;  %3118 = vmatpush1.bf16.msra.mxu1 %v4276_v53 }
 0x2c1   : > { %3120 = vmatprep.subr.bf16.mxu0 %v4122_v13  ;;  %3152 = vmatprep.subr.bf16.mxu1 %v4148_v26 }
 0x376   : > { %v1165_v10 = vpop.f32.mrb[2].mxu0  ;;  %v1236_v54 = vpop.f32.mrb[2].mxu1 }
 0x377   : > { %v1241_v55 = vadd.f32 %v1165_v10, %v1031_v46  ;;  %v1167_v28 = vpop.f32.mrb[3].mxu0  ;;  %v1238_v57 = vpop.f32.mrb[3].mxu1  ;;  %v1243_v7 = vadd.f32 %v1236_v54, %v1033_v4  ;;  %v1759_v4 = vld [vmem:[%s4117_s27 + $0x8] sm:$0xff] }
 0x378   : > { %v1242_v58 = vadd.f32 %v1167_v28, %v1032_v59  ;;  %v1244_v43 = vadd.f32 %v1238_v57, %v1034_v3 }
 0x379   : > { %v2835_v60 = vmul.f32 -1.442695, %v1241_v55 }
 0x37a   : > { %v2836_v61 = vmul.f32 -1.442695, %v1242_v58  ;;  %v2837_v5 = vmul.f32 -1.442695, %v1244_v43 }
 0x37b   : > { %3504 = vpow2.f32 %v2835_v60 }
 0x37c   : > { %3506 = vpow2.f32 %v2836_v61 }
 0x37d   : > { %3508 = vpow2.f32 %v2837_v5  ;;  %v1763_v5 = vld [vmem:[%s4117_s27 + $0x28] sm:$0xff] }
 0x37e   : > { %3510 = vtanh.f32 %v1243_v7  ;;  %v1761_v7 = vld [vmem:[%s4117_s27 + $0x18] sm:$0xff] }
 0x385   : > { %v3505_v13 = vpop.eup %3504 }
 0x386   : > { %v3507_v1 = vpop.eup %3506  ;;  %v1248_v26 = vadd.f32 1.0, %v3505_v13  ;;  %v4419_v13 = vpack.c.bf16 %v1763_v5, %v1759_v4  ;;  %v1805_v5 = vld [vmem:[%s4117_s27 + $0x178] sm:$0xff] }
 0x387   : > { %v1254_v2 = vadd.f32 1.0, %v3507_v1  ;;  %v3509_v8 = vpop.eup %3508  ;;  %v1765_v1 = vld [vmem:[%s4117_s27 + $0x38] sm:$0xff] }
 0x388   : > { %3512 = vrcp.f32 %v1248_v26  ;;  %v3511_v9 = vpop.eup %3510  ;;  %v1261_v20 = vadd.f32 1.0, %v3509_v8  ;;  %v1758_v26 = vld [vmem:[%s4117_s27] sm:$0xff]  ;;  %v4424_v8 = vpack.c.bf16 %v1765_v1, %v1761_v7  ;;  %v1800_v7 = vld [vmem:[%s4117_s27 + $0x150] sm:$0xff] }
 0x389   : > { %3514 = vrcp.f32 %v1254_v2  ;;  %v1762_v2 = vld [vmem:[%s4117_s27 + $0x20] sm:$0xff]  ;;  %v1804_v1 = vld [vmem:[%s4117_s27 + $0x170] sm:$0xff] }
 0x38a   : > { %3516 = vrcp.f32 %v1261_v20  ;;  %v1767_v20 = vld [vmem:[%s4117_s27 + $0x48] sm:$0xff] }
 0x392   : > { %v3513_v15 = vpop.eup %3512 }
 0x393   : > { %v3515_v16 = vpop.eup %3514  ;;  %v1265_v17 = vmul.f32 %v3513_v15, %v3511_v9  ;;  %v4426_v9 = vpack.c.bf16 %v1762_v2, %v1758_v26  ;;  %v1760_v15 = vld [vmem:[%s4117_s27 + $0x10] sm:$0xff]  ;;  %v4518_v2 = vpack.c.bf16 %v1804_v1, %v1800_v7 }
 0x394   : > { %v1264_v23 = vmul.f32 %v3515_v16, %v4317_v42  ;;  %v3517_v25 = vpop.eup %3516  ;;  %v1764_v16 = vld [vmem:[%s4117_s27 + $0x30] sm:$0xff] }
 0x396   : > { %v4355_v24 = vadd.f32 %v1265_v17, %v1264_v23  ;;  %v4431_v17 = vpack.c.bf16 %v1764_v16, %v1760_v15  ;;  %v1771_v23 = vld [vmem:[%s4117_s27 + $0x68] sm:$0xff] }
 0x397   : > { %v1807_v15 = vld [vmem:[%s4117_s27 + $0x188] sm:$0xff] }
 0x398   : > { %3518 = vtanh.f32 %v4355_v24  ;;  %v1811_v16 = vld [vmem:[%s4117_s27 + $0x1a8] sm:$0xff] }
 0x3a2   : > { %v3519_v27 = vpop.eup %3518 }
 0x3a3   : > { %v1268_v32 = vmul.f32 %v3519_v27, %v3517_v25  ;;  %v4439_v25 = vpack.c.bf16 %v1771_v23, %v1767_v20  ;;  %v1773_v27 = vld [vmem:[%s4117_s27 + $0x78] sm:$0xff]  ;;  %v4524_v23 = vpack.c.bf16 %v1811_v16, %v1807_v15 }
 0x3a4   : > { %v1809_v20 = vld [vmem:[%s4117_s27 + $0x198] sm:$0xff] }
 0x3a5   : > { %1270 = vst [vmem:[#allocation3 + $0x8] sm:$0xff] %v1268_v32  ;;  %1405 = vmatmul.mubr.f32.vlgmr.msra.gmra.mrb[4].mxu0 %v1268_v32  ;;  %1476 = vmatmul.mubr.f32.vlgmr.msra.gmra.mrb[4].mxu1 %v1268_v32  ;;  %v1766_v32 = vld [vmem:[%s4117_s27 + $0x40] sm:$0xff] }
 0x3a6   : > { %3122 = vmatpush1.bf16.msra.mxu0 %v4127_v11  ;;  %3154 = vmatpush1.bf16.msra.mxu1 %v4152_v29  ;;  %v1541_v11 = vld [vmem:[%s4117_s27 + $0xc0] sm:$0xff] }
 0x3a7   : > { %3124 = vmatprep.subr.bf16.mxu0 %v4129_v12  ;;  %3156 = vmatprep.subr.bf16.mxu1 %v4167_v37  ;;  %v1545_v12 = vld [vmem:[%s4117_s27 + $0xe0] sm:$0xff] }
 0x3a8   : > { %1645 = vmatprep.mubr.f32.mxu0 %v3708_v0  ;;  %1716 = vmatprep.mubr.f32.mxu1 %v3708_v0  ;;  %v1553_v29 = vld [vmem:[%s4117_s27 + $0x120] sm:$0xff] }
 0x3a9   : > { %v1561_v37 = vld [vmem:[%s4117_s27 + $0x160] sm:$0xff] }
 0x3aa   : > { %3126 = vmatpush1.bf16.msra.mxu0 %v4137_v18  ;;  %3158 = vmatpush1.bf16.msra.mxu1 %v4172_v41  ;;  %v4383_v18 = vpack.c.bf16 %v1545_v12, %v1541_v11  ;;  %v1770_v11 = vld [vmem:[%s4117_s27 + $0x60] sm:$0xff] }
 0x3ab   : > { %3128 = vmatprep.subr.bf16.mxu0 %v4142_v21  ;;  %3160 = vmatprep.subr.bf16.mxu1 %v4184_v49  ;;  %v1549_v21 = vld [vmem:[%s4117_s27 + $0x100] sm:$0xff] }
 0x3ac   : > { %v1565_v49 = vld [vmem:[%s4117_s27 + $0x180] sm:$0xff] }
 0x3ae   : > { %3130 = vmatpush1.bf16.msra.mxu0 %v4155_v30  ;;  %3162 = vmatpush1.bf16.msra.mxu1 %v4191_v52  ;;  %v4389_v30 = vpack.c.bf16 %v1553_v29, %v1549_v21  ;;  %v1569_v52 = vld [vmem:[%s4117_s27 + $0x1a0] sm:$0xff]  ;;  %v4446_v21 = vpack.c.bf16 %v1770_v11, %v1766_v32  ;;  %v1768_v29 = vld [vmem:[%s4117_s27 + $0x50] sm:$0xff] }
 0x3af   : > { %3132 = vmatprep.subr.bf16.mxu0 %v4162_v34  ;;  %3164 = vmatprep.subr.bf16.mxu1 %v4197_v56  ;;  %v1557_v34 = vld [vmem:[%s4117_s27 + $0x140] sm:$0xff]  ;;  %v4400_v56 = vpack.c.bf16 %v1569_v52, %v1565_v49  ;;  %v1775_v49 = vld [vmem:[%s4117_s27 + $0x88] sm:$0xff]  ;;  %v1812_v32 = vld [vmem:[%s4117_s27 + $0x1b0] sm:$0xff] }
 0x3b0   : > { %v4394_v41 = vpack.c.bf16 %v1561_v37, %v1557_v34  ;;  %v1772_v34 = vld [vmem:[%s4117_s27 + $0x70] sm:$0xff]  ;;  %v1779_v52 = vld [vmem:[%s4117_s27 + $0xa8] sm:$0xff] }
 0x3b1   : > { %v4451_v37 = vpack.c.bf16 %v1772_v34, %v1768_v29  ;;  %v1815_v29 = vld [vmem:[%s4117_s27 + $0x1c8] sm:$0xff] }
 0x3b2   : > { %3166 = vmatpush1.bf16.msra.mxu1 %v4213_v6  ;;  %3134 = vmatpush1.bf16.msra.mxu0 %v4383_v18  ;;  %v1577_v6 = vld [vmem:[%s4117_s27 + $0x1e0] sm:$0xff]  ;;  %v1819_v34 = vld [vmem:[%s4117_s27 + $0x1e8] sm:$0xff] }
 0x3b3   : > { %3168 = vmatprep.subr.bf16.mxu1 %v4217_v63  ;;  %3136 = vmatprep.subr.bf16.mxu0 %v4187_v50  ;;  %v1573_v50 = vld [vmem:[%s4117_s27 + $0x1c0] sm:$0xff] }
 0x3b4   : > { %v4406_v63 = vpack.c.bf16 %v1577_v6, %v1573_v50  ;;  %v1777_v50 = vld [vmem:[%s4117_s27 + $0x98] sm:$0xff]  ;;  %v4459_v6 = vpack.c.bf16 %v1779_v52, %v1775_v49 }
 0x3b5   : > { %v1817_v49 = vld [vmem:[%s4117_s27 + $0x1d8] sm:$0xff] }
 0x3b6   : > { %3170 = vmatpush1.bf16.msra.mxu1 %v4233_v19  ;;  %3138 = vmatpush1.bf16.msra.mxu0 %v4389_v30  ;;  %v1272_v19 = vld [vmem:[#allocation2 + $0x40] sm:$0xff]  ;;  %v1821_v52 = vld [vmem:[%s4117_s27 + $0x1f8] sm:$0xff] }
 0x3b7   : > { %3172 = vmatprep.subr.bf16.mxu1 %v4237_v22  ;;  %3140 = vmatprep.subr.bf16.mxu0 %v4207_v62  ;;  %v1273_v62 = vld [vmem:[#allocation2 + $0x48] sm:$0xff] }
 0x3ba   : > { %3174 = vmatpush1.bf16.msra.mxu1 %v4252_v35  ;;  %3142 = vmatpush1.bf16.msra.mxu0 %v4394_v41 }
 0x3bb   : > { %3176 = vmatprep.subr.bf16.mxu1 %v4255_v36  ;;  %3144 = vmatprep.subr.bf16.mxu0 %v4227_v14 }
 0x3be   : > { %3178 = vmatpush1.bf16.msra.mxu1 %v4266_v44  ;;  %3146 = vmatpush1.bf16.msra.mxu0 %v4400_v56 }
 0x3bf   : > { %3180 = vmatprep.subr.bf16.mxu1 %v4269_v45  ;;  %3148 = vmatprep.subr.bf16.mxu0 %v4247_v31 }
 0x3c2   : > { %3182 = vmatpush1.bf16.msra.mxu1 %v4276_v53  ;;  %3150 = vmatpush1.bf16.msra.mxu0 %v4406_v63 }
 0x3c3   : > { %3184 = vmatprep.subr.bf16.mxu0 %v4419_v13  ;;  %3216 = vmatprep.subr.bf16.mxu1 %v4424_v8 }
 0x478   : > { %v1406_v22 = vpop.f32.mrb[4].mxu0  ;;  %v1477_v35 = vpop.f32.mrb[4].mxu1 }
 0x479   : > { %v1482_v36 = vadd.f32 %v1406_v22, %v1272_v19  ;;  %v1408_v44 = vpop.f32.mrb[5].mxu0  ;;  %v1479_v45 = vpop.f32.mrb[5].mxu1  ;;  %v1484_v47 = vadd.f32 %v1477_v35, %v1274_v40  ;;  %v1781_v19 = vld [vmem:[%s4117_s27 + $0xb8] sm:$0xff]  ;;  %v1778_v22 = vld [vmem:[%s4117_s27 + $0xa0] sm:$0xff] }
 0x47a   : > { %v1483_v53 = vadd.f32 %v1408_v44, %v1273_v62  ;;  %v1485_v39 = vadd.f32 %v1479_v45, %v1275_v38  ;;  %v1774_v62 = vld [vmem:[%s4117_s27 + $0x80] sm:$0xff]  ;;  %v4464_v35 = vpack.c.bf16 %v1781_v19, %v1777_v50  ;;  %v1776_v44 = vld [vmem:[%s4117_s27 + $0x90] sm:$0xff]  ;;  %v1785_v38 = vld [vmem:[%s4117_s27 + $0xd8] sm:$0xff]  ;;  %v4541_v19 = vpack.c.bf16 %v1819_v34, %v1815_v29 }
 0x47b   : > { %v2838_v33 = vmul.f32 -1.442695, %v1482_v36  ;;  %v4466_v36 = vpack.c.bf16 %v1778_v22, %v1774_v62  ;;  %v1780_v45 = vld [vmem:[%s4117_s27 + $0xb0] sm:$0xff]  ;;  %v1789_v40 = vld [vmem:[%s4117_s27 + $0xf8] sm:$0xff]  ;;  %v4544_v62 = vpack.c.bf16 %v1821_v52, %v1817_v49 }
 0x47c   : > { %v2839_v14 = vmul.f32 -1.442695, %v1483_v53  ;;  %v2840_v42 = vmul.f32 -1.442695, %v1485_v39  ;;  %v4471_v53 = vpack.c.bf16 %v1780_v45, %v1776_v44  ;;  %v1816_v22 = vld [vmem:[%s4117_s27 + $0x1d0] sm:$0xff] }
 0x47d   : > { %3520 = vpow2.f32 %v2838_v33  ;;  %v1783_v33 = vld [vmem:[%s4117_s27 + $0xc8] sm:$0xff]  ;;  %v1820_v44 = vld [vmem:[%s4117_s27 + $0x1f0] sm:$0xff] }
 0x47e   : > { %3522 = vpow2.f32 %v2839_v14  ;;  %v1787_v14 = vld [vmem:[%s4117_s27 + $0xe8] sm:$0xff]  ;;  %v4551_v45 = vpack.c.bf16 %v1820_v44, %v1816_v22 }
 0x47f   : > { %3524 = vpow2.f32 %v2840_v42  ;;  %v4479_v39 = vpack.c.bf16 %v1787_v14, %v1783_v33  ;;  %v1784_v42 = vld [vmem:[%s4117_s27 + $0xd0] sm:$0xff]  ;;  %v1513_v33 = vld [vmem:[#allocation2 + $0x60] sm:$0xff]  ;;  %v1514_v14 = vld [vmem:[#allocation2 + $0x68] sm:$0xff] }
 0x480   : > { %3526 = vtanh.f32 %v1484_v47  ;;  %v1788_v47 = vld [vmem:[%s4117_s27 + $0xf0] sm:$0xff] }
 0x487   : > { %v3521_v31 = vpop.eup %3520 }
 0x488   : > { %v3523_v48 = vpop.eup %3522  ;;  %v1489_v51 = vadd.f32 1.0, %v3521_v31  ;;  %v4484_v31 = vpack.c.bf16 %v1789_v40, %v1785_v38 }
 0x489   : > { %v1495_v46 = vadd.f32 1.0, %v3523_v48  ;;  %v3525_v59 = vpop.eup %3524  ;;  %v4486_v48 = vpack.c.bf16 %v1788_v47, %v1784_v42 }
 0x48a   : > { %3528 = vrcp.f32 %v1489_v51  ;;  %v3527_v10 = vpop.eup %3526  ;;  %v1502_v57 = vadd.f32 1.0, %v3525_v59  ;;  %v1791_v51 = vld [vmem:[%s4117_s27 + $0x108] sm:$0xff]  ;;  %v1793_v59 = vld [vmem:[%s4117_s27 + $0x118] sm:$0xff] }
 0x48b   : > { %3530 = vrcp.f32 %v1495_v46  ;;  %v1795_v46 = vld [vmem:[%s4117_s27 + $0x128] sm:$0xff] }
 0x48c   : > { %3532 = vrcp.f32 %v1502_v57 }
 0x494   : > { %v3529_v54 = vpop.eup %3528 }
 0x495   : > { %v3531_v55 = vpop.eup %3530  ;;  %v1506_v28 = vmul.f32 %v3529_v54, %v3527_v10  ;;  %v4495_v10 = vpack.c.bf16 %v1795_v46, %v1791_v51  ;;  %v1797_v54 = vld [vmem:[%s4117_s27 + $0x138] sm:$0xff] }
 0x496   : > { %v1505_v58 = vmul.f32 %v3531_v55, %v4355_v24  ;;  %v3533_v61 = vpop.eup %3532  ;;  %v1769_v24 = vld [vmem:[%s4117_s27 + $0x58] sm:$0xff]  ;;  %v1792_v55 = vld [vmem:[%s4117_s27 + $0x110] sm:$0xff]  ;;  %v4500_v57 = vpack.c.bf16 %v1797_v54, %v1793_v59 }
 0x497   : > { %v4444_v12 = vpack.c.bf16 %v1773_v27, %v1769_v24  ;;  %v1813_v24 = vld [vmem:[%s4117_s27 + $0x1b8] sm:$0xff]  ;;  %v1808_v27 = vld [vmem:[%s4117_s27 + $0x190] sm:$0xff] }
 0x498   : > { %v4411_v60 = vadd.f32 %v1506_v28, %v1505_v58  ;;  %v1796_v28 = vld [vmem:[%s4117_s27 + $0x130] sm:$0xff]  ;;  %v4530_v11 = vpack.c.bf16 %v1813_v24, %v1809_v20  ;;  %v4539_v50 = vpack.c.bf16 %v1812_v32, %v1808_v27 }
 0x499   : > { %v4502_v58 = vpack.c.bf16 %v1796_v28, %v1792_v55  ;;  %v1516_v55 = vld [vmem:[#allocation2 + $0x78] sm:$0xff] }
 0x49a   : > { %3534 = vtanh.f32 %v4411_v60 }
 0x4a4   : > { %v3535_v3 = vpop.eup %3534 }
 0x4a5   : > { %v1509_v43 = vmul.f32 %v3535_v3, %v3533_v61  ;;  %v1799_v61 = vld [vmem:[%s4117_s27 + $0x148] sm:$0xff] }
 0x4a6   : > { %v1803_v3 = vld [vmem:[%s4117_s27 + $0x168] sm:$0xff] }
 0x4a7   : > { %1511 = vst [vmem:[#allocation3 + $0x10] sm:$0xff] %v1509_v43  ;;  %1646 = vmatmul.mubr.f32.vlgmr.msra.gmra.mrb[6].mxu0 %v1509_v43  ;;  %1717 = vmatmul.mubr.f32.vlgmr.msra.gmra.mrb[6].mxu1 %v1509_v43  ;;  %v1801_v43 = vld [vmem:[%s4117_s27 + $0x158] sm:$0xff]  ;;  %v4510_v4 = vpack.c.bf16 %v1803_v3, %v1799_v61  ;;  %v1515_v61 = vld [vmem:[#allocation2 + $0x70] sm:$0xff] }
 0x4a8   : > { %1886 = vmatprep.mubr.f32.mxu0 %v3708_v0  ;;  %1957 = vmatprep.mubr.f32.mxu1 %v3708_v0  ;;  %v4516_v26 = vpack.c.bf16 %v1805_v5, %v1801_v43 }
 0x4a9   : > { %3186 = vmatpush1.bf16.msra.mxu0 %v4426_v9  ;;  %3218 = vmatpush1.bf16.msra.mxu1 %v4431_v17 }
 0x4aa   : > { %3188 = vmatprep.subr.bf16.mxu0 %v4439_v25  ;;  %3220 = vmatprep.subr.bf16.mxu1 %v4444_v12 }
 0x4ad   : > { %3190 = vmatpush1.bf16.msra.mxu0 %v4446_v21  ;;  %3222 = vmatpush1.bf16.msra.mxu1 %v4451_v37 }
 0x4ae   : > { %3192 = vmatprep.subr.bf16.mxu0 %v4459_v6  ;;  %3224 = vmatprep.subr.bf16.mxu1 %v4464_v35 }
 0x4b1   : > { %3194 = vmatpush1.bf16.msra.mxu0 %v4466_v36  ;;  %3226 = vmatpush1.bf16.msra.mxu1 %v4471_v53 }
 0x4b2   : > { %3196 = vmatprep.subr.bf16.mxu0 %v4479_v39  ;;  %3228 = vmatprep.subr.bf16.mxu1 %v4484_v31 }
 0x4b5   : > { %3198 = vmatpush1.bf16.msra.mxu0 %v4383_v18  ;;  %3230 = vmatpush1.bf16.msra.mxu1 %v4486_v48 }
 0x4b6   : > { %3200 = vmatprep.subr.bf16.mxu0 %v4495_v10  ;;  %3232 = vmatprep.subr.bf16.mxu1 %v4500_v57 }
 0x4b9   : > { %3202 = vmatpush1.bf16.msra.mxu0 %v4389_v30  ;;  %3234 = vmatpush1.bf16.msra.mxu1 %v4502_v58 }
 0x4ba   : > { %3204 = vmatprep.subr.bf16.mxu0 %v4510_v4  ;;  %3236 = vmatprep.subr.bf16.mxu1 %v4516_v26 }
 0x4bd   : > { %3206 = vmatpush1.bf16.msra.mxu0 %v4394_v41  ;;  %3238 = vmatpush1.bf16.msra.mxu1 %v4518_v2 }
 0x4be   : > { %3208 = vmatprep.subr.bf16.mxu0 %v4524_v23  ;;  %3240 = vmatprep.subr.bf16.mxu1 %v4530_v11 }
 0x4c1   : > { %3210 = vmatpush1.bf16.msra.mxu0 %v4400_v56  ;;  %3242 = vmatpush1.bf16.msra.mxu1 %v4539_v50 }
 0x4c2   : > { %3212 = vmatprep.subr.bf16.mxu0 %v4541_v19  ;;  %3244 = vmatprep.subr.bf16.mxu1 %v4544_v62 }
 0x4c5   : > { %3214 = vmatpush1.bf16.msra.mxu0 %v4406_v63  ;;  %3246 = vmatpush1.bf16.msra.mxu1 %v4551_v45 }
 0x4c6   : > { %3248 = vmatprep.subr.bf16.mxu0 %v4419_v13  ;;  %3280 = vmatprep.subr.bf16.mxu1 %v4424_v8 }
 0x57a   : > { %v1647_v38 = vpop.f32.mrb[6].mxu0  ;;  %v1718_v40 = vpop.f32.mrb[6].mxu1 }
 0x57b   : > { %v1723_v42 = vadd.f32 %v1647_v38, %v1513_v33  ;;  %v1649_v47 = vpop.f32.mrb[7].mxu0  ;;  %v1720_v51 = vpop.f32.mrb[7].mxu1  ;;  %v1725_v43 = vadd.f32 %v1718_v40, %v1515_v61  ;;  %v1755_v33 = vld [vmem:[#allocation2 + $0x88] sm:$0xff] }
 0x57c   : > { %v1724_v46 = vadd.f32 %v1649_v47, %v1514_v14  ;;  %v1726_v28 = vadd.f32 %v1720_v51, %v1516_v55 }
 0x57d   : > { %v2841_v59 = vmul.f32 -1.442695, %v1723_v42 }
 0x57e   : > { %v2842_v54 = vmul.f32 -1.442695, %v1724_v46  ;;  %v2843_v3 = vmul.f32 -1.442695, %v1726_v28  ;;  %v1756_v28 = vld [vmem:[#allocation2 + $0x90] sm:$0xff] }
 0x57f   : > { %3536 = vpow2.f32 %v2841_v59 }
 0x580   : > { %3538 = vpow2.f32 %v2842_v54  ;;  %v1757_v54 = vld [vmem:[#allocation2 + $0x98] sm:$0xff] }
 0x581   : > { %3540 = vpow2.f32 %v2843_v3 }
 0x582   : > { %3542 = vtanh.f32 %v1725_v43 }
 0x589   : > { %v3537_v5 = vpop.eup %3536 }
 0x58a   : > { %v3539_v7 = vpop.eup %3538  ;;  %v1730_v1 = vadd.f32 1.0, %v3537_v5 }
 0x58b   : > { %v1736_v15 = vadd.f32 1.0, %v3539_v7  ;;  %v3541_v16 = vpop.eup %3540 }
 0x58c   : > { %3544 = vrcp.f32 %v1730_v1  ;;  %v3543_v20 = vpop.eup %3542  ;;  %v1743_v29 = vadd.f32 1.0, %v3541_v16 }
 0x58d   : > { %3546 = vrcp.f32 %v1736_v15 }
 0x58e   : > { %3548 = vrcp.f32 %v1743_v29 }
 0x596   : > { %v3545_v24 = vpop.eup %3544 }
 0x597   : > { %v3547_v27 = vpop.eup %3546  ;;  %v1747_v32 = vmul.f32 %v3545_v24, %v3543_v20 }
 0x598   : > { %v1746_v34 = vmul.f32 %v3547_v27, %v4411_v60  ;;  %v3549_v52 = vpop.eup %3548  ;;  %v1754_v60 = vld [vmem:[#allocation2 + $0x80] sm:$0xff] }
 0x59a   : > { %v4559_v49 = vadd.f32 %v1747_v32, %v1746_v34 }
 0x59c   : > { %3550 = vtanh.f32 %v4559_v49 }
 0x5a6   : > { %v3551_v22 = vpop.eup %3550 }
 0x5a7   : > { %v1750_v44 = vmul.f32 %v3551_v22, %v3549_v52 }
 0x5a9   : > { %1752 = vst [vmem:[#allocation3 + $0x18] sm:$0xff] %v1750_v44  ;;  %1887 = vmatmul.mubr.f32.vlgmr.msra.gmra.mrb[8].mxu0 %v1750_v44  ;;  %1958 = vmatmul.mubr.f32.vlgmr.msra.gmra.mrb[8].mxu1 %v1750_v44 }
 0x5aa   : > { %3250 = vmatpush1.bf16.msra.mxu0 %v4426_v9  ;;  %3282 = vmatpush1.bf16.msra.mxu1 %v4431_v17 }
 0x5ab   : > { %3252 = vmatprep.subr.bf16.mxu0 %v4439_v25  ;;  %3284 = vmatprep.subr.bf16.mxu1 %v4444_v12 }
 0x5ac   : > { %2127 = vmatprep.mubr.f32.mxu0 %v3708_v0  ;;  %2198 = vmatprep.mubr.f32.mxu1 %v3708_v0 }
 0x5ae   : > { %3254 = vmatpush1.bf16.msra.mxu0 %v4446_v21  ;;  %3286 = vmatpush1.bf16.msra.mxu1 %v4451_v37 }
 0x5af   : > { %3256 = vmatprep.subr.bf16.mxu0 %v4459_v6  ;;  %3288 = vmatprep.subr.bf16.mxu1 %v4464_v35 }
 0x5b2   : > { %3258 = vmatpush1.bf16.msra.mxu0 %v4466_v36  ;;  %3290 = vmatpush1.bf16.msra.mxu1 %v4471_v53 }
 0x5b3   : > { %3260 = vmatprep.subr.bf16.mxu0 %v4479_v39  ;;  %3292 = vmatprep.subr.bf16.mxu1 %v4484_v31 }
 0x5b6   : > { %3262 = vmatpush1.bf16.msra.mxu0 %v4383_v18  ;;  %3294 = vmatpush1.bf16.msra.mxu1 %v4486_v48 }
 0x5b7   : > { %3264 = vmatprep.subr.bf16.mxu0 %v4495_v10  ;;  %3296 = vmatprep.subr.bf16.mxu1 %v4500_v57 }
 0x5ba   : > { %3266 = vmatpush1.bf16.msra.mxu0 %v4389_v30  ;;  %3298 = vmatpush1.bf16.msra.mxu1 %v4502_v58 }
 0x5bb   : > { %3268 = vmatprep.subr.bf16.mxu0 %v4510_v4  ;;  %3300 = vmatprep.subr.bf16.mxu1 %v4516_v26 }
 0x5be   : > { %3270 = vmatpush1.bf16.msra.mxu0 %v4394_v41  ;;  %3302 = vmatpush1.bf16.msra.mxu1 %v4518_v2 }
 0x5bf   : > { %3272 = vmatprep.subr.bf16.mxu0 %v4524_v23  ;;  %3304 = vmatprep.subr.bf16.mxu1 %v4530_v11 }
 0x5c2   : > { %3274 = vmatpush1.bf16.msra.mxu0 %v4400_v56  ;;  %3306 = vmatpush1.bf16.msra.mxu1 %v4539_v50 }
 0x5c3   : > { %3276 = vmatprep.subr.bf16.mxu0 %v4541_v19  ;;  %3308 = vmatprep.subr.bf16.mxu1 %v4544_v62 }
 0x5c6   : > { %3278 = vmatpush1.bf16.msra.mxu0 %v4406_v63  ;;  %3310 = vmatpush1.bf16.msra.mxu1 %v4551_v45 }
 0x5c7   : > { %3312 = vmatprep.subr.bf16.mxu0 %v4419_v13  ;;  %3344 = vmatprep.subr.bf16.mxu1 %v4424_v8 }
 0x67c   : > { %v1888_v14 = vpop.f32.mrb[8].mxu0  ;;  %v1959_v38 = vpop.f32.mrb[8].mxu1 }
 0x67d   : > { %v1964_v40 = vadd.f32 %v1888_v14, %v1754_v60  ;;  %v1890_v42 = vpop.f32.mrb[9].mxu0  ;;  %v1961_v47 = vpop.f32.mrb[9].mxu1  ;;  %v1966_v3 = vadd.f32 %v1959_v38, %v1756_v28 }
 0x67e   : > { %v1965_v51 = vadd.f32 %v1890_v42, %v1755_v33  ;;  %v1967_v55 = vadd.f32 %v1961_v47, %v1757_v54  ;;  %v1998_v42 = vld [vmem:[#allocation2 + $0xb8] sm:$0xff]  ;;  %v1997_v47 = vld [vmem:[#allocation2 + $0xb0] sm:$0xff] }
 0x67f   : > { %v2844_v46 = vmul.f32 -1.442695, %v1964_v40 }
 0x680   : > { %v2845_v59 = vmul.f32 -1.442695, %v1965_v51  ;;  %v2846_v61 = vmul.f32 -1.442695, %v1967_v55 }
 0x681   : > { %3552 = vpow2.f32 %v2844_v46 }
 0x682   : > { %3554 = vpow2.f32 %v2845_v59 }
 0x683   : > { %3556 = vpow2.f32 %v2846_v61 }
 0x684   : > { %3558 = vtanh.f32 %v1966_v3 }
 0x68b   : > { %v3553_v43 = vpop.eup %3552 }
 0x68c   : > { %v3555_v5 = vpop.eup %3554  ;;  %v1971_v7 = vadd.f32 1.0, %v3553_v43 }
 0x68d   : > { %v1977_v1 = vadd.f32 1.0, %v3555_v5  ;;  %v3557_v15 = vpop.eup %3556 }
 0x68e   : > { %3560 = vrcp.f32 %v1971_v7  ;;  %v3559_v16 = vpop.eup %3558  ;;  %v1984_v32 = vadd.f32 1.0, %v3557_v15 }
 0x68f   : > { %3562 = vrcp.f32 %v1977_v1 }
 0x690   : > { %3564 = vrcp.f32 %v1984_v32  ;;  %v2238_v32 = vld [vmem:[#allocation2 + $0xd0] sm:$0xff] }
 0x698   : > { %v3561_v20 = vpop.eup %3560 }
 0x699   : > { %v3563_v24 = vpop.eup %3562  ;;  %v1988_v27 = vmul.f32 %v3561_v20, %v3559_v16 }
 0x69a   : > { %v1987_v29 = vmul.f32 %v3563_v24, %v4559_v49  ;;  %v3565_v52 = vpop.eup %3564 }
 0x69c   : > { %v4597_v34 = vadd.f32 %v1988_v27, %v1987_v29  ;;  %v2239_v27 = vld [vmem:[#allocation2 + $0xd8] sm:$0xff] }
 0x69e   : > { %3566 = vtanh.f32 %v4597_v34 }
 0x6a8   : > { %v3567_v22 = vpop.eup %3566 }
 0x6a9   : > { %v1991_v44 = vmul.f32 %v3567_v22, %v3565_v52 }
 0x6ab   : > { %1993 = vst [vmem:[#allocation3 + $0x20] sm:$0xff] %v1991_v44  ;;  %2128 = vmatmul.mubr.f32.vlgmr.msra.gmra.mrb[10].mxu0 %v1991_v44  ;;  %2199 = vmatmul.mubr.f32.vlgmr.msra.gmra.mrb[10].mxu1 %v1991_v44 }
 0x6ac   : > { %3314 = vmatpush1.bf16.msra.mxu0 %v4426_v9  ;;  %3346 = vmatpush1.bf16.msra.mxu1 %v4431_v17 }
 0x6ad   : > { %3316 = vmatprep.subr.bf16.mxu0 %v4439_v25  ;;  %3348 = vmatprep.subr.bf16.mxu1 %v4444_v12 }
 0x6ae   : > { %2368 = vmatprep.mubr.f32.mxu0 %v3708_v0  ;;  %2439 = vmatprep.mubr.f32.mxu1 %v3708_v0 }
 0x6b0   : > { %3318 = vmatpush1.bf16.msra.mxu0 %v4446_v21  ;;  %3350 = vmatpush1.bf16.msra.mxu1 %v4451_v37 }
 0x6b1   : > { %3320 = vmatprep.subr.bf16.mxu0 %v4459_v6  ;;  %3352 = vmatprep.subr.bf16.mxu1 %v4464_v35 }
 0x6b4   : > { %3322 = vmatpush1.bf16.msra.mxu0 %v4466_v36  ;;  %3354 = vmatpush1.bf16.msra.mxu1 %v4471_v53 }
 0x6b5   : > { %3324 = vmatprep.subr.bf16.mxu0 %v4479_v39  ;;  %3356 = vmatprep.subr.bf16.mxu1 %v4484_v31 }
 0x6b8   : > { %3326 = vmatpush1.bf16.msra.mxu0 %v4383_v18  ;;  %3358 = vmatpush1.bf16.msra.mxu1 %v4486_v48  ;;  %v1995_v18 = vld [vmem:[#allocation2 + $0xa0] sm:$0xff] }
 0x6b9   : > { %3328 = vmatprep.subr.bf16.mxu0 %v4495_v10  ;;  %3360 = vmatprep.subr.bf16.mxu1 %v4500_v57 }
 0x6bc   : > { %3330 = vmatpush1.bf16.msra.mxu0 %v4389_v30  ;;  %3362 = vmatpush1.bf16.msra.mxu1 %v4502_v58  ;;  %v1996_v30 = vld [vmem:[#allocation2 + $0xa8] sm:$0xff] }
 0x6bd   : > { %3332 = vmatprep.subr.bf16.mxu0 %v4510_v4  ;;  %3364 = vmatprep.subr.bf16.mxu1 %v4516_v26 }
 0x6c0   : > { %3334 = vmatpush1.bf16.msra.mxu0 %v4394_v41  ;;  %3366 = vmatpush1.bf16.msra.mxu1 %v4518_v2 }
 0x6c1   : > { %3336 = vmatprep.subr.bf16.mxu0 %v4524_v23  ;;  %3368 = vmatprep.subr.bf16.mxu1 %v4530_v11 }
 0x6c4   : > { %3338 = vmatpush1.bf16.msra.mxu0 %v4400_v56  ;;  %3370 = vmatpush1.bf16.msra.mxu1 %v4539_v50 }
 0x6c5   : > { %3340 = vmatprep.subr.bf16.mxu0 %v4541_v19  ;;  %3372 = vmatprep.subr.bf16.mxu1 %v4544_v62 }
 0x6c8   : > { %3342 = vmatpush1.bf16.msra.mxu0 %v4406_v63  ;;  %3374 = vmatpush1.bf16.msra.mxu1 %v4551_v45 }
 0x6c9   : > { %3376 = vmatprep.subr.bf16.mxu0 %v4419_v13  ;;  %3408 = vmatprep.subr.bf16.mxu1 %v4424_v8 }
 0x77e   : > { %v2129_v41 = vpop.f32.mrb[10].mxu0  ;;  %v2200_v49 = vpop.f32.mrb[10].mxu1 }
 0x77f   : > { %v2205_v60 = vadd.f32 %v2129_v41, %v1995_v18  ;;  %v2131_v56 = vpop.f32.mrb[11].mxu0  ;;  %v2202_v33 = vpop.f32.mrb[11].mxu1  ;;  %v2207_v46 = vadd.f32 %v2200_v49, %v1997_v47  ;;  %v2478_v47 = vld [vmem:[#allocation2 + $0xe8] sm:$0xff] }
 0x780   : > { %v2206_v14 = vadd.f32 %v2131_v56, %v1996_v30  ;;  %v2208_v63 = vadd.f32 %v2202_v33, %v1998_v42 }
 0x781   : > { %v2847_v38 = vmul.f32 -1.442695, %v2205_v60 }
 0x782   : > { %v2848_v40 = vmul.f32 -1.442695, %v2206_v14  ;;  %v2849_v51 = vmul.f32 -1.442695, %v2208_v63  ;;  %v2477_v63 = vld [vmem:[#allocation2 + $0xe0] sm:$0xff] }
 0x783   : > { %3568 = vpow2.f32 %v2847_v38 }
 0x784   : > { %3570 = vpow2.f32 %v2848_v40 }
 0x785   : > { %3572 = vpow2.f32 %v2849_v51 }
 0x786   : > { %3574 = vtanh.f32 %v2207_v46 }
 0x78d   : > { %v3569_v13 = vpop.eup %3568 }
 0x78e   : > { %v3571_v59 = vpop.eup %3570  ;;  %v2212_v8 = vadd.f32 1.0, %v3569_v13 }
 0x78f   : > { %v2218_v54 = vadd.f32 1.0, %v3571_v59  ;;  %v3573_v55 = vpop.eup %3572 }
 0x790   : > { %3576 = vrcp.f32 %v2212_v8  ;;  %v3575_v28 = vpop.eup %3574  ;;  %v2225_v5 = vadd.f32 1.0, %v3573_v55 }
 0x791   : > { %3578 = vrcp.f32 %v2218_v54 }
 0x792   : > { %3580 = vrcp.f32 %v2225_v5 }
 0x79a   : > { %v3577_v61 = vpop.eup %3576 }
 0x79b   : > { %v3579_v3 = vpop.eup %3578  ;;  %v2229_v43 = vmul.f32 %v3577_v61, %v3575_v28  ;;  %v2480_v61 = vld [vmem:[#allocation2 + $0xf8] sm:$0xff] }
 0x79c   : > { %v2228_v7 = vmul.f32 %v3579_v3, %v4597_v34  ;;  %v3581_v15 = vpop.eup %3580 }
 0x79e   : > { %v4635_v1 = vadd.f32 %v2229_v43, %v2228_v7  ;;  %v2479_v43 = vld [vmem:[#allocation2 + $0xf0] sm:$0xff] }
 0x7a0   : > { %3582 = vtanh.f32 %v4635_v1 }
 0x7aa   : > { %v3583_v16 = vpop.eup %3582 }
 0x7ab   : > { %v2232_v20 = vmul.f32 %v3583_v16, %v3581_v15 }
 0x7ad   : > { %2234 = vst [vmem:[#allocation3 + $0x28] sm:$0xff] %v2232_v20  ;;  %2369 = vmatmul.mubr.f32.vlgmr.msra.gmra.mrb[12].mxu0 %v2232_v20  ;;  %2440 = vmatmul.mubr.f32.vlgmr.msra.gmra.mrb[12].mxu1 %v2232_v20 }
 0x7ae   : > { %3378 = vmatpush1.bf16.msra.mxu0 %v4426_v9  ;;  %3410 = vmatpush1.bf16.msra.mxu1 %v4431_v17  ;;  %v2509_v9 = vld [vmem:[%s4117_s27 + $0xe0] sm:$0xff] }
 0x7af   : > { %3380 = vmatprep.subr.bf16.mxu0 %v4439_v25  ;;  %3412 = vmatprep.subr.bf16.mxu1 %v4444_v12  ;;  %v2513_v25 = vld [vmem:[%s4117_s27 + $0x100] sm:$0xff] }
 0x7b0   : > { %2609 = vmatprep.mubr.f32.mxu0 %v3708_v0  ;;  %2680 = vmatprep.mubr.f32.mxu1 %v3708_v0  ;;  %v2505_v0 = vld [vmem:[%s4117_s27 + $0xc0] sm:$0xff] }
 0x7b1   : > { %v3389_v17 = vpack.c.bf16 %v2509_v9, %v2505_v0  ;;  %v2517_v12 = vld [vmem:[%s4117_s27 + $0x120] sm:$0xff] }
 0x7b2   : > { %3382 = vmatpush1.bf16.msra.mxu0 %v4446_v21  ;;  %3414 = vmatpush1.bf16.msra.mxu1 %v4451_v37  ;;  %v3393_v21 = vpack.c.bf16 %v2517_v12, %v2513_v25  ;;  %v2521_v37 = vld [vmem:[%s4117_s27 + $0x140] sm:$0xff] }
 0x7b3   : > { %3384 = vmatprep.subr.bf16.mxu0 %v4459_v6  ;;  %3416 = vmatprep.subr.bf16.mxu1 %v4464_v35  ;;  %v2525_v6 = vld [vmem:[%s4117_s27 + $0x160] sm:$0xff] }
 0x7b4   : > { %v3397_v35 = vpack.c.bf16 %v2525_v6, %v2521_v37 }
 0x7b6   : > { %3386 = vmatpush1.bf16.msra.mxu0 %v4466_v36  ;;  %3418 = vmatpush1.bf16.msra.mxu1 %v4471_v53  ;;  %v2529_v36 = vld [vmem:[%s4117_s27 + $0x180] sm:$0xff] }
 0x7b7   : > { %3388 = vmatprep.subr.bf16.mxu0 %v4479_v39  ;;  %3420 = vmatprep.subr.bf16.mxu1 %v4484_v31  ;;  %v2533_v53 = vld [vmem:[%s4117_s27 + $0x1a0] sm:$0xff] }
 0x7b8   : > { %v3401_v39 = vpack.c.bf16 %v2533_v53, %v2529_v36  ;;  %v2537_v31 = vld [vmem:[%s4117_s27 + $0x1c0] sm:$0xff] }
 0x7ba   : > { %3422 = vmatpush1.bf16.msra.mxu1 %v4486_v48  ;;  %3390 = vmatpush1.bf16.msra.mxu0 %v3389_v17  ;;  %v2541_v48 = vld [vmem:[%s4117_s27 + $0x1e0] sm:$0xff] }
 0x7bb   : > { %3424 = vmatprep.subr.bf16.mxu1 %v4500_v57  ;;  %3392 = vmatprep.subr.bf16.mxu0 %v4495_v10  ;;  %v3405_v57 = vpack.c.bf16 %v2541_v48, %v2537_v31  ;;  %v2236_v10 = vld [vmem:[#allocation2 + $0xc0] sm:$0xff] }
 0x7be   : > { %3426 = vmatpush1.bf16.msra.mxu1 %v4502_v58  ;;  %3394 = vmatpush1.bf16.msra.mxu0 %v3393_v21  ;;  %v2237_v58 = vld [vmem:[#allocation2 + $0xc8] sm:$0xff] }
 0x7bf   : > { %3428 = vmatprep.subr.bf16.mxu1 %v4516_v26  ;;  %3396 = vmatprep.subr.bf16.mxu0 %v4510_v4 }
 0x7c2   : > { %3430 = vmatpush1.bf16.msra.mxu1 %v4518_v2  ;;  %3398 = vmatpush1.bf16.msra.mxu0 %v3397_v35 }
 0x7c3   : > { %3432 = vmatprep.subr.bf16.mxu1 %v4530_v11  ;;  %3400 = vmatprep.subr.bf16.mxu0 %v4524_v23 }
 0x7c6   : > { %3434 = vmatpush1.bf16.msra.mxu1 %v4539_v50  ;;  %3402 = vmatpush1.bf16.msra.mxu0 %v3401_v39  ;;  %v2857_v39 = vld [vmem:[%s4700_s4] ss:$0 sm:$0xff] (%p2719_p4) }
 0x7c7   : > { %3436 = vmatprep.subr.bf16.mxu1 %v4544_v62  ;;  %3404 = vmatprep.subr.bf16.mxu0 %v4541_v19 }
 0x7ca   : > { %3438 = vmatpush1.bf16.msra.mxu1 %v4551_v45  ;;  %3406 = vmatpush1.bf16.msra.mxu0 %v3405_v57 }
 0x880   : > { %v2370_v26 = vpop.f32.mrb[12].mxu0  ;;  %v2441_v2 = vpop.f32.mrb[12].mxu1 }
 0x881   : > { %v2446_v11 = vadd.f32 %v2370_v26, %v2236_v10  ;;  %v2372_v50 = vpop.f32.mrb[13].mxu0  ;;  %v2443_v4 = vpop.f32.mrb[13].mxu1  ;;  %v2448_v34 = vadd.f32 %v2441_v2, %v2238_v32 }
 0x882   : > { %v2447_v62 = vadd.f32 %v2372_v50, %v2237_v58  ;;  %v2449_v23 = vadd.f32 %v2443_v4, %v2239_v27 }
 0x883   : > { %v2850_v45 = vmul.f32 -1.442695, %v2446_v11 }
 0x884   : > { %v2851_v24 = vmul.f32 -1.442695, %v2447_v62  ;;  %v2852_v29 = vmul.f32 -1.442695, %v2449_v23 }
 0x885   : > { %3584 = vpow2.f32 %v2850_v45 }
 0x886   : > { %3586 = vpow2.f32 %v2851_v24 }
 0x887   : > { %3588 = vpow2.f32 %v2852_v29 }
 0x888   : > { %3590 = vtanh.f32 %v2448_v34 }
 0x88f   : > { %v3585_v52 = vpop.eup %3584 }
 0x890   : > { %v3587_v19 = vpop.eup %3586  ;;  %v2453_v22 = vadd.f32 1.0, %v3585_v52 }
 0x891   : > { %v2459_v44 = vadd.f32 1.0, %v3587_v19  ;;  %v3589_v18 = vpop.eup %3588 }
 0x892   : > { %3592 = vrcp.f32 %v2453_v22  ;;  %v3591_v30 = vpop.eup %3590  ;;  %v2466_v56 = vadd.f32 1.0, %v3589_v18 }
 0x893   : > { %3594 = vrcp.f32 %v2459_v44 }
 0x894   : > { %3596 = vrcp.f32 %v2466_v56 }
 0x89c   : > { %v3593_v41 = vpop.eup %3592 }
 0x89d   : > { %v3595_v49 = vpop.eup %3594  ;;  %v2470_v60 = vmul.f32 %v3593_v41, %v3591_v30 }
 0x89e   : > { %v2469_v33 = vmul.f32 %v3595_v49, %v4635_v1  ;;  %v3597_v38 = vpop.eup %3596 }
 0x8a0   : > { %v2471_v14 = vadd.f32 %v2470_v60, %v2469_v33 }
 0x8a2   : > { %3598 = vtanh.f32 %v2471_v14 }
 0x8ac   : > { %v3599_v40 = vpop.eup %3598 }
 0x8ad   : > { %v2473_v42 = vmul.f32 %v3599_v40, %v3597_v38 }
 0x8af   : > { %2475 = vst [vmem:[#allocation3 + $0x30] sm:$0xff] %v2473_v42  ;;  %2610 = vmatmul.mubr.f32.vlgmr.msra.gmra.mrb[14].mxu0 %v2473_v42  ;;  %2681 = vmatmul.mubr.f32.vlgmr.msra.gmra.mrb[14].mxu1 %v2473_v42 }
 0x982   : > { %v2611_v51 = vpop.f32.mrb[14].mxu0  ;;  %v2682_v46 = vpop.f32.mrb[14].mxu1 }
 0x983   : > { %v2687_v13 = vadd.f32 %v2611_v51, %v2477_v63  ;;  %v2613_v59 = vpop.f32.mrb[15].mxu0  ;;  %v2684_v8 = vpop.f32.mrb[15].mxu1  ;;  %v2689_v7 = vadd.f32 %v2682_v46, %v2479_v43 }
 0x984   : > { %v2688_v54 = vadd.f32 %v2613_v59, %v2478_v47  ;;  %v2690_v3 = vadd.f32 %v2684_v8, %v2480_v61 }
 0x985   : > { %v2853_v55 = vmul.f32 -1.442695, %v2687_v13 }
 0x986   : > { %v2854_v28 = vmul.f32 -1.442695, %v2688_v54  ;;  %v2855_v5 = vmul.f32 -1.442695, %v2690_v3 }
 0x987   : > { %3600 = vpow2.f32 %v2853_v55 }
 0x988   : > { %3602 = vpow2.f32 %v2854_v28 }
 0x989   : > { %3604 = vpow2.f32 %v2855_v5 }
 0x98a   : > { %3606 = vtanh.f32 %v2689_v7 }
 0x991   : > { %v3601_v1 = vpop.eup %3600 }
 0x992   : > { %v3603_v15 = vpop.eup %3602  ;;  %v2694_v16 = vadd.f32 1.0, %v3601_v1 }
 0x993   : > { %v2700_v20 = vadd.f32 1.0, %v3603_v15  ;;  %v3605_v0 = vpop.eup %3604 }
 0x994   : > { %3608 = vrcp.f32 %v2694_v16  ;;  %v3607_v9 = vpop.eup %3606  ;;  %v2707_v21 = vadd.f32 1.0, %v3605_v0 }
 0x995   : > { %3610 = vrcp.f32 %v2700_v20 }
 0x996   : > { %3612 = vrcp.f32 %v2707_v21 }
 0x99e   : > { %v3609_v17 = vpop.eup %3608 }
 0x99f   : > { %v3611_v25 = vpop.eup %3610  ;;  %v2711_v12 = vmul.f32 %v3609_v17, %v3607_v9 }
 0x9a0   : > { %v2710_v37 = vmul.f32 %v3611_v25, %v2471_v14  ;;  %v3613_v35 = vpop.eup %3612 }
 0x9a2   : > { %v2712_v6 = vadd.f32 %v2711_v12, %v2710_v37 }
 0x9a4   : > { %3614 = vtanh.f32 %v2712_v6  ;;  %2718 = vst [vmem:[%s3841_s23] sm:$0xff] %v2712_v6 }
 0x9ab   : > { %2723 = sbr.rel (!%p2719_p4) target bundleno = 2626 (0xa42), region = 64 }
 0x9ae   : > { %v3615_v36 = vpop.eup %3614 }
 0x9af   : > { %v2714_v53 = vmul.f32 %v3615_v36, %v3613_v35 }
 0x9b1   : > { %2716 = vst [vmem:[#allocation3 + $0x38] sm:$0xff] %v2714_v53  ;;  %2717 = vst [vmem:[%s3837_s10] sm:$0xff] %v2714_v53  ;;  %v2731_v31 = vmul.f32 (%p2719_p4), %v2857_v39, %v2714_v53 }
 0x9b3   : > { %2732 = vadd.xlane.f32.xlu0 %v2731_v31 }
 0xa40   : > { %v2733_v48 = vpop.xlane.xlu0 %2732 }
 0xa41   : > { %2735 = vst.msk [vmem:[%s4701_s5] sm:$0xff] %vm2734_vm0, %v2733_v48 }
 0xa42 PF: > { %s17_s20 = sadd.s32 1, %s3702_s20   ;;  %s4710_s18 = smov %s3698_s19 }
 0xa43   : > { %p14_p9 = scmp.ge.s32.totalorder %s17_s20, 4   ;;  %s4711_s19 = smov %s4713_s22 }
 0xa45   :  { %16 = sbr.rel (!%p14_p9) target bundleno = 3 (0x3), region = 113 }
 0xa4c   :  { %2747 = vsyncpa [#allocation7], 1 }
 0xa4d   :  { %2749 = vsyncpa [#allocation7 + $0x1], 1 }
 0xa4e   :  { %2750 = vsyncpa [#allocation9], 1 }

</bundles_post_ra>
